<compile_context>
chip_gen: v7x
topology: tpu7x:2x2x1
jax: 0.10.0
libtpu: 0.0.40
codegen_flags: <defaults>
</compile_context>

<pallas_src>
import jax
import jax.numpy as jnp
from jax import lax
from jax.experimental import pallas as pl
from jax.experimental.pallas import tpu as pltpu

EM_STEP = 3
REGULAR = 0.5


# ----------------------------------------------------------------------------
# Per-batch-element math (traced inside the Pallas kernel; also reused as the
# pure-JAX reference via vmap so kernel and reference share identical math).
# ----------------------------------------------------------------------------
def _cgfg_compute(x, mask, gp, w01a, b01a, w01b, b01b, w2, b2):
    """x:(Cin,N) mask:(K,N) gp:(K,C) -> out:(C,N)."""
    bf16 = jnp.bfloat16

    def mm(a, b):      # a @ b              (contract a.axis1 with b.axis0)
        return lax.dot_general(a.astype(bf16), b.astype(bf16),
                               (((1,), (0,)), ((), ())),
                               preferred_element_type=jnp.float32)

    def mm_rT(a, b):   # a @ b.T            (contract last axes)
        return lax.dot_general(a.astype(bf16), b.astype(bf16),
                               (((1,), (1,)), ((), ())),
                               preferred_element_type=jnp.float32)

    def mm_lT(a, b):   # a.T @ b            (contract first axes)
        return lax.dot_general(a.astype(bf16), b.astype(bf16),
                               (((0,), (0,)), ((), ())),
                               preferred_element_type=jnp.float32)

    def l2n_k(p):      # p / (1e-8 + ||p||) with the norm over K (torch .norm(dim=1))
        s = jnp.sum(p * p, axis=0, keepdims=True)
        return p * (1.0 / (1e-8 + jnp.sqrt(s)))

    def softmax_k(a):  # softmax over K; torch's extra s/(1e-8+sum(s)) is an f32 no-op
        a = a - jnp.max(a, axis=0, keepdims=True)
        e = jnp.exp(a)
        return e * (1.0 / jnp.sum(e, axis=0, keepdims=True))

    # Fused conv0 + conv1 (1x1 conv + folded BN + ReLU; Dropout2d = identity in eval).
    f01 = jnp.maximum(mm(w01a, x) + b01a, 0.0)        # (2C, N)   first layers, fused
    f01 = jnp.maximum(mm(w01b, f01) + b01b, 0.0)      # (2C, N)   block-diag second layers
    C = w2.shape[0]
    f0 = f01[:C]                                      # (C, N)    conv0 branch
    f1 = f01[C:]                                      # (C, N)    conv1 branch
    scale = C ** (-REGULAR)

    # ---- local EM loop ----
    pm = mask                                         # (K, N)
    protos = None
    for _ in range(EM_STEP):
        protos = l2n_k(mm_rT(pm, f0))                 # (K, C)  contraction over N
        pm = softmax_k(scale * mm(protos, f0))        # (K, N)  contraction over C
    ctx_l = mm_lT(protos, pm)                         # (C, N)  == protos^T @ pm

    # ---- global EM loop ----
    gpn = l2n_k(gp)                                   # (K, C)
    for _ in range(EM_STEP):
        pm = softmax_k(scale * mm(gpn, f1))           # (K, N)
        gpn = l2n_k(mm_rT(pm, f1))                    # (K, C)
    ctx_g = mm_lT(gpn, pm)                            # (C, N)

    # conv2 on the channel-concat of the two contexts.
    ctx = jnp.concatenate([ctx_l, ctx_g], axis=0)     # (2C, N)
    return jnp.maximum(mm(w2, ctx) + b2, 0.0)         # (C, N)


# ----------------------------------------------------------------------------
# Pallas kernel: one grid step = one batch element, everything in VMEM.
# ----------------------------------------------------------------------------
def _cgfg_kernel(x_ref, mask_ref, gp_ref,
                 w01a_ref, b01a_ref, w01b_ref, b01b_ref, w2_ref, b2_ref,
                 out_ref):
    out_ref[0] = _cgfg_compute(
        x_ref[0], mask_ref[0], gp_ref[0],
        w01a_ref[...], b01a_ref[...], w01b_ref[...], b01b_ref[...],
        w2_ref[...], b2_ref[...])


def cgfg_forward(x_cn, mask, gp, params):
    (w01a, b01a, w01b, b01b, w2, b2) = params
    b, Cin, N = x_cn.shape
    K = mask.shape[1]
    C = w2.shape[0]

    def full2d(arr):
        return pl.BlockSpec(arr.shape, lambda i: (0, 0))

    in_specs = [
        pl.BlockSpec((1, Cin, N), lambda i: (i, 0, 0)),
        pl.BlockSpec((1, K, N), lambda i: (i, 0, 0)),
        pl.BlockSpec((1, K, C), lambda i: (i, 0, 0)),
    ] + [full2d(p) for p in (w01a, b01a, w01b, b01b, w2, b2)]

    # TODO(synk): for production-size N / C, tile the conv + prototype phases
    # over N chunks (emit_pipeline) and set vmem_limit_bytes for v7x's 64 MiB VMEM.
    return pl.pallas_call(
        _cgfg_kernel,
        out_shape=jax.ShapeDtypeStruct((b, C, N), jnp.float32),
        grid_spec=pltpu.PrefetchScalarGridSpec(
            num_scalar_prefetch=0,
            grid=(b,),
            in_specs=in_specs,
            out_specs=pl.BlockSpec((1, C, N), lambda i: (i, 0, 0)),
        ),
        compiler_params=pltpu.CompilerParams(
            dimension_semantics=("parallel",)),   # batch elements are independent
    )(x_cn, mask, gp, w01a, b01a, w01b, b01b, w2, b2)


# ----------------------------------------------------------------------------
# Deterministic parameter init (Conv2d 1x1 + eval-mode BatchNorm, folded),
# with conv0/conv1 fused: stacked first-layer weight + block-diagonal second layer.
# Weight layout: (Cout, Cin); bias layout: (Cout, 1).
# ----------------------------------------------------------------------------
def _dense_bn(key, cin, cout):
    k1, k2, k3, k4, k5, k6 = jax.random.split(key, 6)
    w = jax.random.normal(k1, (cout, cin), jnp.float32) / jnp.sqrt(cin)
    bias = 0.05 * jax.random.normal(k2, (cout,), jnp.float32)
    gamma = 1.0 + 0.1 * jax.random.normal(k3, (cout,), jnp.float32)
    beta = 0.05 * jax.random.normal(k4, (cout,), jnp.float32)
    mean = 0.05 * jax.random.normal(k5, (cout,), jnp.float32)
    var = 1.0 + 0.1 * jnp.abs(jax.random.normal(k6, (cout,), jnp.float32))
    s = gamma / jnp.sqrt(var + 1e-5)
    w_f = w * s[:, None]
    b_f = ((bias - mean) * s + beta).reshape(cout, 1)
    return w_f, b_f


def init_params(key, cin, c):
    keys = jax.random.split(key, 5)
    w0a, b0a = _dense_bn(keys[0], cin, c)
    w0b, b0b = _dense_bn(keys[1], c, c)
    w1a, b1a = _dense_bn(keys[2], cin, c)
    w1b, b1b = _dense_bn(keys[3], c, c)
    w2, b2 = _dense_bn(keys[4], 2 * c, c)                 # conv2: (2C -> C)

    w01a = jnp.concatenate([w0a, w1a], axis=0)            # (2C, Cin)
    b01a = jnp.concatenate([b0a, b1a], axis=0)            # (2C, 1)
    z = jnp.zeros((c, c), jnp.float32)
    w01b = jnp.concatenate(
        [jnp.concatenate([w0b, z], axis=1),
         jnp.concatenate([z, w1b], axis=1)], axis=0)      # (2C, 2C) block-diagonal
    b01b = jnp.concatenate([b0b, b1b], axis=0)            # (2C, 1)
    return (w01a, b01a, w01b, b01b, w2, b2)


# TODO(synk): Dropout2d / BatchNorm training-mode (batch statistics, stochastic
# channel masking) are not implemented — eval-mode semantics only.

if __name__ == "__main__":
    b, Cin, C, H, W, K = 2, 32, 32, 16, 16, 4
    N = H * W

    key = jax.random.PRNGKey(0)
    kx, km, kg, kp = jax.random.split(key, 4)
    x = jax.random.normal(kx, (b, Cin, H, W), jnp.float32)            # NCHW like PyTorch
    coarse_mask = jax.nn.softmax(
        jax.random.normal(km, (b, K, H, W), jnp.float32), axis=1)
    global_protos = jax.random.normal(kg, (b, K, C), jnp.float32)
    params = init_params(kp, Cin, C)

    # Channel-major flattening only — no host-side transposes in (C, N) layout.
    x_cn = x.reshape(b, Cin, N)
    mask_cn = coarse_mask.reshape(b, K, N)

    out = cgfg_forward(x_cn, mask_cn, global_protos, params)          # (b, C, N)
    out_nchw = out.reshape(b, C, H, W)
    jax.block_until_ready(out_nchw)

    # pure-JAX reference (identical math, no Pallas)
    ref = jax.vmap(lambda xb, mb, gb: _cgfg_compute(xb, mb, gb, *params))(
        x_cn, mask_cn, global_protos)
    assert out.shape == (b, C, N)
    assert jnp.allclose(out, ref, atol=2e-2, rtol=2e-2), \
        f"max abs diff {jnp.max(jnp.abs(out - ref))}"

    print("KERNEL_OK")
</pallas_src>

<mosaic_0001>
module attributes {stable_mosaic.version = 11 : i64} {
  func.func @_cgfg_kernel(%arg0: i32, %arg1: memref<1x32x256xf32, #tpu.memory_space<vmem>>, %arg2: memref<1x4x256xf32, #tpu.memory_space<vmem>>, %arg3: memref<1x4x32xf32, #tpu.memory_space<vmem>>, %arg4: memref<64x32xf32, #tpu.memory_space<vmem>>, %arg5: memref<64x1xf32, #tpu.memory_space<vmem>>, %arg6: memref<64x64xf32, #tpu.memory_space<vmem>>, %arg7: memref<64x1xf32, #tpu.memory_space<vmem>>, %arg8: memref<32x64xf32, #tpu.memory_space<vmem>>, %arg9: memref<32x1xf32, #tpu.memory_space<vmem>>, %arg10: memref<1x32x256xf32, #tpu.memory_space<vmem>>) attributes {dimension_semantics = [#tpu.dimension_semantics<parallel>], iteration_bounds = array<i64: 2>, scalar_prefetch = 0 : i64, scratch_operands = 0 : i64, tpu.core_type = #tpu.core_type<tc>, window_params = [{transform_indices = @transform_0, window_bounds = array<i64: 1, 32, 256>}, {transform_indices = @transform_1, window_bounds = array<i64: 1, 4, 256>}, {transform_indices = @transform_2, window_bounds = array<i64: 1, 4, 32>}, {pipeline_mode = #tpu.pipeline_mode<synchronous>, transform_indices = @transform_3, window_bounds = array<i64: 64, 32>}, {pipeline_mode = #tpu.pipeline_mode<synchronous>, transform_indices = @transform_4, window_bounds = array<i64: 64, 1>}, {pipeline_mode = #tpu.pipeline_mode<synchronous>, transform_indices = @transform_5, window_bounds = array<i64: 64, 64>}, {pipeline_mode = #tpu.pipeline_mode<synchronous>, transform_indices = @transform_6, window_bounds = array<i64: 64, 1>}, {pipeline_mode = #tpu.pipeline_mode<synchronous>, transform_indices = @transform_7, window_bounds = array<i64: 32, 64>}, {pipeline_mode = #tpu.pipeline_mode<synchronous>, transform_indices = @transform_8, window_bounds = array<i64: 32, 1>}, {transform_indices = @transform_9, window_bounds = array<i64: 1, 32, 256>}]} {
    %c0 = arith.constant 0 : index
    %c0_0 = arith.constant 0 : index
    %c0_1 = arith.constant 0 : index
    %0 = vector.load %arg1[%c0, %c0_0, %c0_1] : memref<1x32x256xf32, #tpu.memory_space<vmem>>, vector<1x32x256xf32>
    %1 = vector.shape_cast %0 : vector<1x32x256xf32> to vector<32x256xf32>
    %c0_2 = arith.constant 0 : index
    %c0_3 = arith.constant 0 : index
    %c0_4 = arith.constant 0 : index
    %2 = vector.load %arg2[%c0_2, %c0_3, %c0_4] : memref<1x4x256xf32, #tpu.memory_space<vmem>>, vector<1x4x256xf32>
    %3 = vector.shape_cast %2 : vector<1x4x256xf32> to vector<4x256xf32>
    %c0_5 = arith.constant 0 : index
    %c0_6 = arith.constant 0 : index
    %c0_7 = arith.constant 0 : index
    %4 = vector.load %arg3[%c0_5, %c0_6, %c0_7] : memref<1x4x32xf32, #tpu.memory_space<vmem>>, vector<1x4x32xf32>
    %5 = vector.shape_cast %4 : vector<1x4x32xf32> to vector<4x32xf32>
    %c0_8 = arith.constant 0 : index
    %c0_9 = arith.constant 0 : index
    %6 = vector.load %arg4[%c0_8, %c0_9] : memref<64x32xf32, #tpu.memory_space<vmem>>, vector<64x32xf32>
    %c0_10 = arith.constant 0 : index
    %c0_11 = arith.constant 0 : index
    %7 = vector.load %arg5[%c0_10, %c0_11] : memref<64x1xf32, #tpu.memory_space<vmem>>, vector<64x1xf32>
    %c0_12 = arith.constant 0 : index
    %c0_13 = arith.constant 0 : index
    %8 = vector.load %arg6[%c0_12, %c0_13] : memref<64x64xf32, #tpu.memory_space<vmem>>, vector<64x64xf32>
    %c0_14 = arith.constant 0 : index
    %c0_15 = arith.constant 0 : index
    %9 = vector.load %arg7[%c0_14, %c0_15] : memref<64x1xf32, #tpu.memory_space<vmem>>, vector<64x1xf32>
    %c0_16 = arith.constant 0 : index
    %c0_17 = arith.constant 0 : index
    %10 = vector.load %arg8[%c0_16, %c0_17] : memref<32x64xf32, #tpu.memory_space<vmem>>, vector<32x64xf32>
    %c0_18 = arith.constant 0 : index
    %c0_19 = arith.constant 0 : index
    %11 = vector.load %arg9[%c0_18, %c0_19] : memref<32x1xf32, #tpu.memory_space<vmem>>, vector<32x1xf32>
    %12 = arith.truncf %6 : vector<64x32xf32> to vector<64x32xbf16>
    %13 = arith.truncf %1 : vector<32x256xf32> to vector<32x256xbf16>
    %cst = arith.constant dense<0.000000e+00> : vector<64x256xf32>
    %14 = tpu.matmul %12, %13, %cst {dimension_numbers = #tpu.dot_dimension_numbers<[1], [0], [0], [1], [0, 0, 1, 1], [], []>} : vector<64x32xbf16>, vector<32x256xbf16>, vector<64x256xf32> -> vector<64x256xf32>
    %15 = vector.broadcast %7 : vector<64x1xf32> to vector<64x256xf32>
    %16 = arith.addf %14, %15 : vector<64x256xf32>
    %cst_20 = arith.constant 0.000000e+00 : f32
    %17 = vector.broadcast %cst_20 : f32 to vector<64x256xf32>
    %18 = arith.maximumf %16, %17 : vector<64x256xf32>
    %19 = arith.truncf %8 : vector<64x64xf32> to vector<64x64xbf16>
    %20 = arith.truncf %18 : vector<64x256xf32> to vector<64x256xbf16>
    %cst_21 = arith.constant dense<0.000000e+00> : vector<64x256xf32>
    %21 = tpu.matmul %19, %20, %cst_21 {dimension_numbers = #tpu.dot_dimension_numbers<[1], [0], [0], [1], [0, 0, 1, 1], [], []>} : vector<64x64xbf16>, vector<64x256xbf16>, vector<64x256xf32> -> vector<64x256xf32>
    %22 = vector.broadcast %9 : vector<64x1xf32> to vector<64x256xf32>
    %23 = arith.addf %21, %22 : vector<64x256xf32>
    %cst_22 = arith.constant 0.000000e+00 : f32
    %24 = vector.broadcast %cst_22 : f32 to vector<64x256xf32>
    %25 = arith.maximumf %23, %24 : vector<64x256xf32>
    %26 = vector.extract_strided_slice %25 {offsets = [0, 0], sizes = [32, 256], strides = [1, 1]} : vector<64x256xf32> to vector<32x256xf32>
    %27 = vector.extract_strided_slice %25 {offsets = [32, 0], sizes = [32, 256], strides = [1, 1]} : vector<64x256xf32> to vector<32x256xf32>
    %28 = arith.truncf %3 : vector<4x256xf32> to vector<4x256xbf16>
    %29 = arith.truncf %26 : vector<32x256xf32> to vector<32x256xbf16>
    %cst_23 = arith.constant dense<0.000000e+00> : vector<4x32xf32>
    %30 = tpu.matmul %28, %29, %cst_23 {dimension_numbers = #tpu.dot_dimension_numbers<[1], [1], [0], [0], [0, 0, 1, 0], [], []>} : vector<4x256xbf16>, vector<32x256xbf16>, vector<4x32xf32> -> vector<4x32xf32>
    %31 = arith.mulf %30, %30 : vector<4x32xf32>
    %cst_24 = arith.constant dense<0.000000e+00> : vector<32xf32>
    %32 = vector.multi_reduction <add>, %31, %cst_24 [0] : vector<4x32xf32> to vector<32xf32>
    %33 = vector.shape_cast %32 : vector<32xf32> to vector<1x32xf32>
    %34 = math.sqrt %33 : vector<1x32xf32>
    %cst_25 = arith.constant 9.99999993E-9 : f32
    %35 = vector.broadcast %cst_25 : f32 to vector<1x32xf32>
    %36 = arith.addf %35, %34 : vector<1x32xf32>
    %cst_26 = arith.constant 1.000000e+00 : f32
    %37 = vector.broadcast %cst_26 : f32 to vector<1x32xf32>
    %38 = arith.divf %37, %36 : vector<1x32xf32>
    %39 = vector.broadcast %38 : vector<1x32xf32> to vector<4x32xf32>
    %40 = arith.mulf %30, %39 : vector<4x32xf32>
    %41 = arith.truncf %40 : vector<4x32xf32> to vector<4x32xbf16>
    %42 = arith.truncf %26 : vector<32x256xf32> to vector<32x256xbf16>
    %cst_27 = arith.constant dense<0.000000e+00> : vector<4x256xf32>
    %43 = tpu.matmul %41, %42, %cst_27 {dimension_numbers = #tpu.dot_dimension_numbers<[1], [0], [0], [1], [0, 0, 1, 1], [], []>} : vector<4x32xbf16>, vector<32x256xbf16>, vector<4x256xf32> -> vector<4x256xf32>
    %cst_28 = arith.constant 0.176776692 : f32
    %44 = vector.broadcast %cst_28 : f32 to vector<4x256xf32>
    %45 = arith.mulf %44, %43 : vector<4x256xf32>
    %cst_29 = arith.constant dense<0xFF800000> : vector<256xf32>
    %46 = vector.multi_reduction <maximumf>, %45, %cst_29 [0] : vector<4x256xf32> to vector<256xf32>
    %47 = vector.shape_cast %46 : vector<256xf32> to vector<1x256xf32>
    %48 = vector.broadcast %47 : vector<1x256xf32> to vector<4x256xf32>
    %49 = arith.subf %45, %48 : vector<4x256xf32>
    %50 = math.exp %49 : vector<4x256xf32>
    %cst_30 = arith.constant dense<0.000000e+00> : vector<256xf32>
    %51 = vector.multi_reduction <add>, %50, %cst_30 [0] : vector<4x256xf32> to vector<256xf32>
    %52 = vector.shape_cast %51 : vector<256xf32> to vector<1x256xf32>
    %cst_31 = arith.constant 1.000000e+00 : f32
    %53 = vector.broadcast %cst_31 : f32 to vector<1x256xf32>
    %54 = arith.divf %53, %52 : vector<1x256xf32>
    %55 = vector.broadcast %54 : vector<1x256xf32> to vector<4x256xf32>
    %56 = arith.mulf %50, %55 : vector<4x256xf32>
    %57 = arith.truncf %56 : vector<4x256xf32> to vector<4x256xbf16>
    %58 = arith.truncf %26 : vector<32x256xf32> to vector<32x256xbf16>
    %cst_32 = arith.constant dense<0.000000e+00> : vector<4x32xf32>
    %59 = tpu.matmul %57, %58, %cst_32 {dimension_numbers = #tpu.dot_dimension_numbers<[1], [1], [0], [0], [0, 0, 1, 0], [], []>} : vector<4x256xbf16>, vector<32x256xbf16>, vector<4x32xf32> -> vector<4x32xf32>
    %60 = arith.mulf %59, %59 : vector<4x32xf32>
    %cst_33 = arith.constant dense<0.000000e+00> : vector<32xf32>
    %61 = vector.multi_reduction <add>, %60, %cst_33 [0] : vector<4x32xf32> to vector<32xf32>
    %62 = vector.shape_cast %61 : vector<32xf32> to vector<1x32xf32>
    %63 = math.sqrt %62 : vector<1x32xf32>
    %cst_34 = arith.constant 9.99999993E-9 : f32
    %64 = vector.broadcast %cst_34 : f32 to vector<1x32xf32>
    %65 = arith.addf %64, %63 : vector<1x32xf32>
    %cst_35 = arith.constant 1.000000e+00 : f32
    %66 = vector.broadcast %cst_35 : f32 to vector<1x32xf32>
    %67 = arith.divf %66, %65 : vector<1x32xf32>
    %68 = vector.broadcast %67 : vector<1x32xf32> to vector<4x32xf32>
    %69 = arith.mulf %59, %68 : vector<4x32xf32>
    %70 = arith.truncf %69 : vector<4x32xf32> to vector<4x32xbf16>
    %71 = arith.truncf %26 : vector<32x256xf32> to vector<32x256xbf16>
    %cst_36 = arith.constant dense<0.000000e+00> : vector<4x256xf32>
    %72 = tpu.matmul %70, %71, %cst_36 {dimension_numbers = #tpu.dot_dimension_numbers<[1], [0], [0], [1], [0, 0, 1, 1], [], []>} : vector<4x32xbf16>, vector<32x256xbf16>, vector<4x256xf32> -> vector<4x256xf32>
    %cst_37 = arith.constant 0.176776692 : f32
    %73 = vector.broadcast %cst_37 : f32 to vector<4x256xf32>
    %74 = arith.mulf %73, %72 : vector<4x256xf32>
    %cst_38 = arith.constant dense<0xFF800000> : vector<256xf32>
    %75 = vector.multi_reduction <maximumf>, %74, %cst_38 [0] : vector<4x256xf32> to vector<256xf32>
    %76 = vector.shape_cast %75 : vector<256xf32> to vector<1x256xf32>
    %77 = vector.broadcast %76 : vector<1x256xf32> to vector<4x256xf32>
    %78 = arith.subf %74, %77 : vector<4x256xf32>
    %79 = math.exp %78 : vector<4x256xf32>
    %cst_39 = arith.constant dense<0.000000e+00> : vector<256xf32>
    %80 = vector.multi_reduction <add>, %79, %cst_39 [0] : vector<4x256xf32> to vector<256xf32>
    %81 = vector.shape_cast %80 : vector<256xf32> to vector<1x256xf32>
    %cst_40 = arith.constant 1.000000e+00 : f32
    %82 = vector.broadcast %cst_40 : f32 to vector<1x256xf32>
    %83 = arith.divf %82, %81 : vector<1x256xf32>
    %84 = vector.broadcast %83 : vector<1x256xf32> to vector<4x256xf32>
    %85 = arith.mulf %79, %84 : vector<4x256xf32>
    %86 = arith.truncf %85 : vector<4x256xf32> to vector<4x256xbf16>
    %87 = arith.truncf %26 : vector<32x256xf32> to vector<32x256xbf16>
    %cst_41 = arith.constant dense<0.000000e+00> : vector<4x32xf32>
    %88 = tpu.matmul %86, %87, %cst_41 {dimension_numbers = #tpu.dot_dimension_numbers<[1], [1], [0], [0], [0, 0, 1, 0], [], []>} : vector<4x256xbf16>, vector<32x256xbf16>, vector<4x32xf32> -> vector<4x32xf32>
    %89 = arith.mulf %88, %88 : vector<4x32xf32>
    %cst_42 = arith.constant dense<0.000000e+00> : vector<32xf32>
    %90 = vector.multi_reduction <add>, %89, %cst_42 [0] : vector<4x32xf32> to vector<32xf32>
    %91 = vector.shape_cast %90 : vector<32xf32> to vector<1x32xf32>
    %92 = math.sqrt %91 : vector<1x32xf32>
    %cst_43 = arith.constant 9.99999993E-9 : f32
    %93 = vector.broadcast %cst_43 : f32 to vector<1x32xf32>
    %94 = arith.addf %93, %92 : vector<1x32xf32>
    %cst_44 = arith.constant 1.000000e+00 : f32
    %95 = vector.broadcast %cst_44 : f32 to vector<1x32xf32>
    %96 = arith.divf %95, %94 : vector<1x32xf32>
    %97 = vector.broadcast %96 : vector<1x32xf32> to vector<4x32xf32>
    %98 = arith.mulf %88, %97 : vector<4x32xf32>
    %99 = arith.truncf %98 : vector<4x32xf32> to vector<4x32xbf16>
    %100 = arith.truncf %26 : vector<32x256xf32> to vector<32x256xbf16>
    %cst_45 = arith.constant dense<0.000000e+00> : vector<4x256xf32>
    %101 = tpu.matmul %99, %100, %cst_45 {dimension_numbers = #tpu.dot_dimension_numbers<[1], [0], [0], [1], [0, 0, 1, 1], [], []>} : vector<4x32xbf16>, vector<32x256xbf16>, vector<4x256xf32> -> vector<4x256xf32>
    %cst_46 = arith.constant 0.176776692 : f32
    %102 = vector.broadcast %cst_46 : f32 to vector<4x256xf32>
    %103 = arith.mulf %102, %101 : vector<4x256xf32>
    %cst_47 = arith.constant dense<0xFF800000> : vector<256xf32>
    %104 = vector.multi_reduction <maximumf>, %103, %cst_47 [0] : vector<4x256xf32> to vector<256xf32>
    %105 = vector.shape_cast %104 : vector<256xf32> to vector<1x256xf32>
    %106 = vector.broadcast %105 : vector<1x256xf32> to vector<4x256xf32>
    %107 = arith.subf %103, %106 : vector<4x256xf32>
    %108 = math.exp %107 : vector<4x256xf32>
    %cst_48 = arith.constant dense<0.000000e+00> : vector<256xf32>
    %109 = vector.multi_reduction <add>, %108, %cst_48 [0] : vector<4x256xf32> to vector<256xf32>
    %110 = vector.shape_cast %109 : vector<256xf32> to vector<1x256xf32>
    %cst_49 = arith.constant 1.000000e+00 : f32
    %111 = vector.broadcast %cst_49 : f32 to vector<1x256xf32>
    %112 = arith.divf %111, %110 : vector<1x256xf32>
    %113 = vector.broadcast %112 : vector<1x256xf32> to vector<4x256xf32>
    %114 = arith.mulf %108, %113 : vector<4x256xf32>
    %115 = arith.truncf %98 : vector<4x32xf32> to vector<4x32xbf16>
    %116 = arith.truncf %114 : vector<4x256xf32> to vector<4x256xbf16>
    %cst_50 = arith.constant dense<0.000000e+00> : vector<32x256xf32>
    %117 = tpu.matmul %115, %116, %cst_50 {dimension_numbers = #tpu.dot_dimension_numbers<[0], [0], [1], [1], [0, 1, 1, 1], [], []>} : vector<4x32xbf16>, vector<4x256xbf16>, vector<32x256xf32> -> vector<32x256xf32>
    %118 = arith.mulf %5, %5 : vector<4x32xf32>
    %cst_51 = arith.constant dense<0.000000e+00> : vector<32xf32>
    %119 = vector.multi_reduction <add>, %118, %cst_51 [0] : vector<4x32xf32> to vector<32xf32>
    %120 = vector.shape_cast %119 : vector<32xf32> to vector<1x32xf32>
    %121 = math.sqrt %120 : vector<1x32xf32>
    %cst_52 = arith.constant 9.99999993E-9 : f32
    %122 = vector.broadcast %cst_52 : f32 to vector<1x32xf32>
    %123 = arith.addf %122, %121 : vector<1x32xf32>
    %cst_53 = arith.constant 1.000000e+00 : f32
    %124 = vector.broadcast %cst_53 : f32 to vector<1x32xf32>
    %125 = arith.divf %124, %123 : vector<1x32xf32>
    %126 = vector.broadcast %125 : vector<1x32xf32> to vector<4x32xf32>
    %127 = arith.mulf %5, %126 : vector<4x32xf32>
    %128 = arith.truncf %127 : vector<4x32xf32> to vector<4x32xbf16>
    %129 = arith.truncf %27 : vector<32x256xf32> to vector<32x256xbf16>
    %cst_54 = arith.constant dense<0.000000e+00> : vector<4x256xf32>
    %130 = tpu.matmul %128, %129, %cst_54 {dimension_numbers = #tpu.dot_dimension_numbers<[1], [0], [0], [1], [0, 0, 1, 1], [], []>} : vector<4x32xbf16>, vector<32x256xbf16>, vector<4x256xf32> -> vector<4x256xf32>
    %cst_55 = arith.constant 0.176776692 : f32
    %131 = vector.broadcast %cst_55 : f32 to vector<4x256xf32>
    %132 = arith.mulf %131, %130 : vector<4x256xf32>
    %cst_56 = arith.constant dense<0xFF800000> : vector<256xf32>
    %133 = vector.multi_reduction <maximumf>, %132, %cst_56 [0] : vector<4x256xf32> to vector<256xf32>
    %134 = vector.shape_cast %133 : vector<256xf32> to vector<1x256xf32>
    %135 = vector.broadcast %134 : vector<1x256xf32> to vector<4x256xf32>
    %136 = arith.subf %132, %135 : vector<4x256xf32>
    %137 = math.exp %136 : vector<4x256xf32>
    %cst_57 = arith.constant dense<0.000000e+00> : vector<256xf32>
    %138 = vector.multi_reduction <add>, %137, %cst_57 [0] : vector<4x256xf32> to vector<256xf32>
    %139 = vector.shape_cast %138 : vector<256xf32> to vector<1x256xf32>
    %cst_58 = arith.constant 1.000000e+00 : f32
    %140 = vector.broadcast %cst_58 : f32 to vector<1x256xf32>
    %141 = arith.divf %140, %139 : vector<1x256xf32>
    %142 = vector.broadcast %141 : vector<1x256xf32> to vector<4x256xf32>
    %143 = arith.mulf %137, %142 : vector<4x256xf32>
    %144 = arith.truncf %143 : vector<4x256xf32> to vector<4x256xbf16>
    %145 = arith.truncf %27 : vector<32x256xf32> to vector<32x256xbf16>
    %cst_59 = arith.constant dense<0.000000e+00> : vector<4x32xf32>
    %146 = tpu.matmul %144, %145, %cst_59 {dimension_numbers = #tpu.dot_dimension_numbers<[1], [1], [0], [0], [0, 0, 1, 0], [], []>} : vector<4x256xbf16>, vector<32x256xbf16>, vector<4x32xf32> -> vector<4x32xf32>
    %147 = arith.mulf %146, %146 : vector<4x32xf32>
    %cst_60 = arith.constant dense<0.000000e+00> : vector<32xf32>
    %148 = vector.multi_reduction <add>, %147, %cst_60 [0] : vector<4x32xf32> to vector<32xf32>
    %149 = vector.shape_cast %148 : vector<32xf32> to vector<1x32xf32>
    %150 = math.sqrt %149 : vector<1x32xf32>
    %cst_61 = arith.constant 9.99999993E-9 : f32
    %151 = vector.broadcast %cst_61 : f32 to vector<1x32xf32>
    %152 = arith.addf %151, %150 : vector<1x32xf32>
    %cst_62 = arith.constant 1.000000e+00 : f32
    %153 = vector.broadcast %cst_62 : f32 to vector<1x32xf32>
    %154 = arith.divf %153, %152 : vector<1x32xf32>
    %155 = vector.broadcast %154 : vector<1x32xf32> to vector<4x32xf32>
    %156 = arith.mulf %146, %155 : vector<4x32xf32>
    %157 = arith.truncf %156 : vector<4x32xf32> to vector<4x32xbf16>
    %158 = arith.truncf %27 : vector<32x256xf32> to vector<32x256xbf16>
    %cst_63 = arith.constant dense<0.000000e+00> : vector<4x256xf32>
    %159 = tpu.matmul %157, %158, %cst_63 {dimension_numbers = #tpu.dot_dimension_numbers<[1], [0], [0], [1], [0, 0, 1, 1], [], []>} : vector<4x32xbf16>, vector<32x256xbf16>, vector<4x256xf32> -> vector<4x256xf32>
    %cst_64 = arith.constant 0.176776692 : f32
    %160 = vector.broadcast %cst_64 : f32 to vector<4x256xf32>
    %161 = arith.mulf %160, %159 : vector<4x256xf32>
    %cst_65 = arith.constant dense<0xFF800000> : vector<256xf32>
    %162 = vector.multi_reduction <maximumf>, %161, %cst_65 [0] : vector<4x256xf32> to vector<256xf32>
    %163 = vector.shape_cast %162 : vector<256xf32> to vector<1x256xf32>
    %164 = vector.broadcast %163 : vector<1x256xf32> to vector<4x256xf32>
    %165 = arith.subf %161, %164 : vector<4x256xf32>
    %166 = math.exp %165 : vector<4x256xf32>
    %cst_66 = arith.constant dense<0.000000e+00> : vector<256xf32>
    %167 = vector.multi_reduction <add>, %166, %cst_66 [0] : vector<4x256xf32> to vector<256xf32>
    %168 = vector.shape_cast %167 : vector<256xf32> to vector<1x256xf32>
    %cst_67 = arith.constant 1.000000e+00 : f32
    %169 = vector.broadcast %cst_67 : f32 to vector<1x256xf32>
    %170 = arith.divf %169, %168 : vector<1x256xf32>
    %171 = vector.broadcast %170 : vector<1x256xf32> to vector<4x256xf32>
    %172 = arith.mulf %166, %171 : vector<4x256xf32>
    %173 = arith.truncf %172 : vector<4x256xf32> to vector<4x256xbf16>
    %174 = arith.truncf %27 : vector<32x256xf32> to vector<32x256xbf16>
    %cst_68 = arith.constant dense<0.000000e+00> : vector<4x32xf32>
    %175 = tpu.matmul %173, %174, %cst_68 {dimension_numbers = #tpu.dot_dimension_numbers<[1], [1], [0], [0], [0, 0, 1, 0], [], []>} : vector<4x256xbf16>, vector<32x256xbf16>, vector<4x32xf32> -> vector<4x32xf32>
    %176 = arith.mulf %175, %175 : vector<4x32xf32>
    %cst_69 = arith.constant dense<0.000000e+00> : vector<32xf32>
    %177 = vector.multi_reduction <add>, %176, %cst_69 [0] : vector<4x32xf32> to vector<32xf32>
    %178 = vector.shape_cast %177 : vector<32xf32> to vector<1x32xf32>
    %179 = math.sqrt %178 : vector<1x32xf32>
    %cst_70 = arith.constant 9.99999993E-9 : f32
    %180 = vector.broadcast %cst_70 : f32 to vector<1x32xf32>
    %181 = arith.addf %180, %179 : vector<1x32xf32>
    %cst_71 = arith.constant 1.000000e+00 : f32
    %182 = vector.broadcast %cst_71 : f32 to vector<1x32xf32>
    %183 = arith.divf %182, %181 : vector<1x32xf32>
    %184 = vector.broadcast %183 : vector<1x32xf32> to vector<4x32xf32>
    %185 = arith.mulf %175, %184 : vector<4x32xf32>
    %186 = arith.truncf %185 : vector<4x32xf32> to vector<4x32xbf16>
    %187 = arith.truncf %27 : vector<32x256xf32> to vector<32x256xbf16>
    %cst_72 = arith.constant dense<0.000000e+00> : vector<4x256xf32>
    %188 = tpu.matmul %186, %187, %cst_72 {dimension_numbers = #tpu.dot_dimension_numbers<[1], [0], [0], [1], [0, 0, 1, 1], [], []>} : vector<4x32xbf16>, vector<32x256xbf16>, vector<4x256xf32> -> vector<4x256xf32>
    %cst_73 = arith.constant 0.176776692 : f32
    %189 = vector.broadcast %cst_73 : f32 to vector<4x256xf32>
    %190 = arith.mulf %189, %188 : vector<4x256xf32>
    %cst_74 = arith.constant dense<0xFF800000> : vector<256xf32>
    %191 = vector.multi_reduction <maximumf>, %190, %cst_74 [0] : vector<4x256xf32> to vector<256xf32>
    %192 = vector.shape_cast %191 : vector<256xf32> to vector<1x256xf32>
    %193 = vector.broadcast %192 : vector<1x256xf32> to vector<4x256xf32>
    %194 = arith.subf %190, %193 : vector<4x256xf32>
    %195 = math.exp %194 : vector<4x256xf32>
    %cst_75 = arith.constant dense<0.000000e+00> : vector<256xf32>
    %196 = vector.multi_reduction <add>, %195, %cst_75 [0] : vector<4x256xf32> to vector<256xf32>
    %197 = vector.shape_cast %196 : vector<256xf32> to vector<1x256xf32>
    %cst_76 = arith.constant 1.000000e+00 : f32
    %198 = vector.broadcast %cst_76 : f32 to vector<1x256xf32>
    %199 = arith.divf %198, %197 : vector<1x256xf32>
    %200 = vector.broadcast %199 : vector<1x256xf32> to vector<4x256xf32>
    %201 = arith.mulf %195, %200 : vector<4x256xf32>
    %202 = arith.truncf %201 : vector<4x256xf32> to vector<4x256xbf16>
    %203 = arith.truncf %27 : vector<32x256xf32> to vector<32x256xbf16>
    %cst_77 = arith.constant dense<0.000000e+00> : vector<4x32xf32>
    %204 = tpu.matmul %202, %203, %cst_77 {dimension_numbers = #tpu.dot_dimension_numbers<[1], [1], [0], [0], [0, 0, 1, 0], [], []>} : vector<4x256xbf16>, vector<32x256xbf16>, vector<4x32xf32> -> vector<4x32xf32>
    %205 = arith.mulf %204, %204 : vector<4x32xf32>
    %cst_78 = arith.constant dense<0.000000e+00> : vector<32xf32>
    %206 = vector.multi_reduction <add>, %205, %cst_78 [0] : vector<4x32xf32> to vector<32xf32>
    %207 = vector.shape_cast %206 : vector<32xf32> to vector<1x32xf32>
    %208 = math.sqrt %207 : vector<1x32xf32>
    %cst_79 = arith.constant 9.99999993E-9 : f32
    %209 = vector.broadcast %cst_79 : f32 to vector<1x32xf32>
    %210 = arith.addf %209, %208 : vector<1x32xf32>
    %cst_80 = arith.constant 1.000000e+00 : f32
    %211 = vector.broadcast %cst_80 : f32 to vector<1x32xf32>
    %212 = arith.divf %211, %210 : vector<1x32xf32>
    %213 = vector.broadcast %212 : vector<1x32xf32> to vector<4x32xf32>
    %214 = arith.mulf %204, %213 : vector<4x32xf32>
    %215 = arith.truncf %214 : vector<4x32xf32> to vector<4x32xbf16>
    %216 = arith.truncf %201 : vector<4x256xf32> to vector<4x256xbf16>
    %cst_81 = arith.constant dense<0.000000e+00> : vector<32x256xf32>
    %217 = tpu.matmul %215, %216, %cst_81 {dimension_numbers = #tpu.dot_dimension_numbers<[0], [0], [1], [1], [0, 1, 1, 1], [], []>} : vector<4x32xbf16>, vector<4x256xbf16>, vector<32x256xf32> -> vector<32x256xf32>
    %218 = tpu.concatenate %117, %217 in 0 : vector<32x256xf32>, vector<32x256xf32> -> vector<64x256xf32>
    %219 = arith.truncf %10 : vector<32x64xf32> to vector<32x64xbf16>
    %220 = arith.truncf %218 : vector<64x256xf32> to vector<64x256xbf16>
    %cst_82 = arith.constant dense<0.000000e+00> : vector<32x256xf32>
    %221 = tpu.matmul %219, %220, %cst_82 {dimension_numbers = #tpu.dot_dimension_numbers<[1], [0], [0], [1], [0, 0, 1, 1], [], []>} : vector<32x64xbf16>, vector<64x256xbf16>, vector<32x256xf32> -> vector<32x256xf32>
    %222 = vector.broadcast %11 : vector<32x1xf32> to vector<32x256xf32>
    %223 = arith.addf %221, %222 : vector<32x256xf32>
    %cst_83 = arith.constant 0.000000e+00 : f32
    %224 = vector.broadcast %cst_83 : f32 to vector<32x256xf32>
    %225 = arith.maximumf %223, %224 : vector<32x256xf32>
    %c0_84 = arith.constant 0 : index
    %c0_85 = arith.constant 0 : index
    %c0_86 = arith.constant 0 : index
    %226 = vector.load %arg10[%c0_84, %c0_85, %c0_86] : memref<1x32x256xf32, #tpu.memory_space<vmem>>, vector<1x32x256xf32>
    %227 = vector.shape_cast %226 : vector<1x32x256xf32> to vector<32x256xf32>
    %228 = vector.shape_cast %225 : vector<32x256xf32> to vector<1x32x256xf32>
    tpu.vector_store %arg10[%c0_84, %c0_85, %c0_86], %228 {strides = array<i32>} : memref<1x32x256xf32, #tpu.memory_space<vmem>>, vector<1x32x256xf32>,
    return
  }
  func.func @transform_0(%arg0: i32) -> (i32, i32, i32) {
    %c0_i32 = arith.constant 0 : i32
    %c0_i32_0 = arith.constant 0 : i32
    %c0_i32_1 = arith.constant 0 : i32
    return %arg0, %c0_i32, %c0_i32_0 : i32, i32, i32
  }
  func.func @transform_1(%arg0: i32) -> (i32, i32, i32) {
    %c0_i32 = arith.constant 0 : i32
    %c0_i32_0 = arith.constant 0 : i32
    %c0_i32_1 = arith.constant 0 : i32
    return %arg0, %c0_i32, %c0_i32_0 : i32, i32, i32
  }
  func.func @transform_2(%arg0: i32) -> (i32, i32, i32) {
    %c0_i32 = arith.constant 0 : i32
    %c0_i32_0 = arith.constant 0 : i32
    %c0_i32_1 = arith.constant 0 : i32
    return %arg0, %c0_i32, %c0_i32_0 : i32, i32, i32
  }
  func.func @transform_3(%arg0: i32) -> (i32, i32) {
    %c0_i32 = arith.constant 0 : i32
    %c0_i32_0 = arith.constant 0 : i32
    %c0_i32_1 = arith.constant 0 : i32
    return %c0_i32, %c0_i32_0 : i32, i32
  }
  func.func @transform_4(%arg0: i32) -> (i32, i32) {
    %c0_i32 = arith.constant 0 : i32
    %c0_i32_0 = arith.constant 0 : i32
    %c0_i32_1 = arith.constant 0 : i32
    return %c0_i32, %c0_i32_0 : i32, i32
  }
  func.func @transform_5(%arg0: i32) -> (i32, i32) {
    %c0_i32 = arith.constant 0 : i32
    %c0_i32_0 = arith.constant 0 : i32
    %c0_i32_1 = arith.constant 0 : i32
    return %c0_i32, %c0_i32_0 : i32, i32
  }
  func.func @transform_6(%arg0: i32) -> (i32, i32) {
    %c0_i32 = arith.constant 0 : i32
    %c0_i32_0 = arith.constant 0 : i32
    %c0_i32_1 = arith.constant 0 : i32
    return %c0_i32, %c0_i32_0 : i32, i32
  }
  func.func @transform_7(%arg0: i32) -> (i32, i32) {
    %c0_i32 = arith.constant 0 : i32
    %c0_i32_0 = arith.constant 0 : i32
    %c0_i32_1 = arith.constant 0 : i32
    return %c0_i32, %c0_i32_0 : i32, i32
  }
  func.func @transform_8(%arg0: i32) -> (i32, i32) {
    %c0_i32 = arith.constant 0 : i32
    %c0_i32_0 = arith.constant 0 : i32
    %c0_i32_1 = arith.constant 0 : i32
    return %c0_i32, %c0_i32_0 : i32, i32
  }
  func.func @transform_9(%arg0: i32) -> (i32, i32, i32) {
    %c0_i32 = arith.constant 0 : i32
    %c0_i32_0 = arith.constant 0 : i32
    %c0_i32_1 = arith.constant 0 : i32
    return %arg0, %c0_i32, %c0_i32_0 : i32, i32, i32
  }
}

</mosaic_0001>

<bundles_post_ra>
// kernel: tpu_custom_call.1
= control target key start
LH: loop header
LB: loop body
LE: loop exit
PB: predicated region body
PF: predicated region fallthrough
CT: control target
= control target key end

     0   :  { %s2854_s0 = inlined_call_operand.vmem [shape: f32[2,32,256], index: 0, kind: input, shape index: {}]   ;;  %s2855_s1 = inlined_call_operand.hbm [shape: f32[2,4,256], index: 1, kind: input, shape index: {}]   ;;  %s2856_s2 = inlined_call_operand.vmem [shape: f32[2,4,32], index: 2, kind: input, shape index: {}]   ;;  %s2857_s3 = inlined_call_operand.vmem [shape: f32[64,32], index: 3, kind: input, shape index: {}]   ;;  %s2858_s4 = inlined_call_operand.vmem [shape: f32[64,1], index: 4, kind: input, shape index: {}]   ;;  %s2859_s5 = inlined_call_operand.vmem [shape: f32[64,64], index: 5, kind: input, shape index: {}]   ;;  %s2860_s6 = inlined_call_operand.vmem [shape: f32[64,1], index: 6, kind: input, shape index: {}]   ;;  %s2861_s7 = inlined_call_operand.vmem [shape: f32[32,64], index: 7, kind: input, shape index: {}]   ;;  %s2862_s8 = inlined_call_operand.vmem [shape: f32[32,1], index: 8, kind: input, shape index: {}]   ;;  %s2863_s9 = inlined_call_operand.hbm [shape: f32[2,32,256], index: 9, kind: output, shape index: {}]  }
   0x1   :  { %2865 = sst [smem:[#allocation8_spill]] %s2854_s0 }
   0x2   :  { %14 = vsyncpa [#allocation3], 0 }
   0x3   :  { %16 = vsyncpa [#allocation3 + $0x1], 0 }
   0x4   :  { %17 = vsyncpa [#allocation4], 0 }
   0x5   :  { %19 = vsyncpa [#allocation4 + $0x1], 0  ;;  %s2367_s30 = smov 0   ;;  %s2369_s10 = smov 0  }
   0x6   :  { %s2371_s11 = smov 0   ;;  %s2373_s12 = smov 0  }
   0x7 LB: > { %s2388_s13 = sadd.s32 4294967295, %s2310_s12   ;;  %s2044_s14 = sadd.s32 4294967294, %s2310_s12   ;;  %s2310_s12 = sphi %s2373_s12, %s2880_s12   ;;  %s2306_s11 = sphi %s2371_s11, %s2879_s11   ;;  %s2302_s10 = sphi %s2369_s10, %s2878_s10   ;;  %s2298_s30 = sphi %s2367_s30, %s2877_s30  }
   0x8   : > { %s2392_s15 = sadd.s32 1, %s2310_s12   ;;  %s58_s16 = sadd.s32 1, %s2306_s11 }
   0x9   : > { %s55_s17 = ssub.s32 %s2310_s12, %s2392_s15  ;;  %p65_p0 = scmp.ne.s32.totalorder %s2306_s11, %s2302_s10 }
   0xa   : > { %p56_p1 = scmp.eq.s32.totalorder %s55_s17, 0  ;;  %p66_p2 = scmp.eq.s32.totalorder %s2310_s12, 0 }
   0xb   : > { %p71_p3 = scmp.ne.s32.totalorder %s2302_s10, %s2298_s30  ;;  %p72_p4 = scmp.eq.s32.totalorder %s2388_s13, 0 }
   0xc   : > { %s2404_s18 = scalar_select %p56_p1, %s2306_s11, %s58_s16  }
   0xd   : > { %p2406_p5 = por %p66_p2, %p65_p0  ;;  %p2410_p6 = por %p72_p4, %p71_p3 }
   0xe   : > { %p247_p7 = scmp.eq.s32.totalorder %s2388_s13, 1  ;;  %p253_p8 = scmp.eq.s32.totalorder %s2044_s14, 1 }
   0xf   : > { %p2098_p10 = scmp.lt.s32.totalorder %s2310_s12, 2  ;;  %s299_s23 = sand.u32 1, %s2306_s11  }
  0x10   : > { %p2417_p11 = por %p247_p7, %p65_p0  ;;  %p2421_p12 = por %p253_p8, %p71_p3 }
  0x11   : > { %s2083_s24 = sshll.u32 %s2310_s12, 7  ;;  %s2047_s25 = sshll.u32 %s299_s23, 3 }
  0x12   : > { %s2868_s21 = scalar_select %p2417_p11, 1, 0 }
  0x13   : > { %s2869_s22 = scalar_select %p2421_p12, 1, 0 }
  0x14   : > { %s2430_s28 = scalar_lea.hbm %s2855_s1, %s2083_s24  ;;  %s303_s29 = scalar_lea.vmem [#allocation2], %s2047_s25 }
  0x15   : > { %s311_s14 = sshll.u32 %s303_s29, 4  ;;  %p2434_p13 = pnand %p2098_p10, %p2406_p5  ;;  %s2438_s14 = int_to_ptr.vmem [resolvable:$true] %s311_s14 }
  0x16   : > { %s300_s17 = scalar_lea.sflag [#allocation3], %s299_s23  ;;  %s2214_s24 = scalar_lea.hbm %s2430_s28, 128 }
  0x17   : > { %p2215_p2 = scmp.ne.s32.totalorder %s2430_s28, %s2214_s24  ;;  %p2216_p3 = pneg %p2434_p13 }
  0x18   : > { %s2219_s26 = scalar_lea.hbm %s2855_s1, 256  ;;  %p2220_p5 = scmp.lt.u32.totalorder %s2430_s28, %s2855_s1 }
  0x19   : > { %p2217_p4 = pnand %p2216_p3, %p2215_p2  ;;  %p2221_p8 = scmp.lt.u32.totalorder %s2219_s26, %s2214_s24 }
  0x1a   : > { %p2223_p9 = scmp.lt.u32.totalorder %s2214_s24, %s2430_s28 }
  0x1b   : > { %p2218_p7 = pneg %p2217_p4  ;;  %p2222_p10 = por %p2221_p8, %p2220_p5 }
  0x1d   : > { %p2224_p0 = por %p2223_p9, %p2222_p10 }
  0x1f   : > { %p2225_p1 = pnand %p2224_p0, %p2218_p7 }
  0x21   : > { %2228 = shalt.err (!%p2225_p1)
}
  0x22   : > { %s2229_s23 = scalar_lea.vmem %s2438_s14, 128  ;;  %s2312_s19 = smov [#allocation2]  }
  0x23   : > { %p2230_p2 = scmp.ne.s32.totalorder %s2438_s14, %s2229_s23  ;;  %s2234_s25 = sshll.u32 %s2312_s19, 4  ;;  %s2235_s25 = int_to_ptr.vmem [resolvable:$false] %s2234_s25 }
  0x24   : > { %s2236_s27 = scalar_lea.vmem %s2235_s25, 256  ;;  %p2237_p11 = scmp.lt.s32.totalorder %s2438_s14, %s2235_s25 }
  0x25   : > { %p2232_p4 = pnand %p2230_p2, %p2216_p3  ;;  %p2238_p5 = scmp.lt.s32.totalorder %s2236_s27, %s2229_s23 }
  0x27   : > { %p2233_p12 = pneg %p2232_p4  ;;  %p2239_p8 = por %p2238_p5, %p2237_p11 }
  0x29   : > { %p2240_p9 = pnand %p2239_p8, %p2233_p12 }
  0x2b   : > { %2243 = shalt.err (!%p2240_p9)
}
  0x2c   : > { %2093 = dma.hbm_to_vmem [thread:$0]  (!%p2434_p13), %s2430_s28, 128, %s2438_s14, %s300_s17  }
  0x2d   : > { %p2871_p0 = scmp.lt.s32.totalorder %s2310_s12, 3  ;;  %p2872_p1 = scmp.ge.s32.totalorder %s2310_s12, 1 }
  0x2f   : > { %p324_p3 = pnand %p2872_p1, %p2871_p0 }
  0x30   : > { %s2472_s24 = sand.u32 (!%p324_p3), 1, %s2302_s10  }
  0x31   : > { %327 = sbr.rel (%p324_p3) target bundleno = 4073 (0xfe9), region = 56  ;;  %s2051_s26 = sshll.u32 (!%p324_p3), %s2472_s24, 3 }
  0x32   : > { %s330_s29 = scalar_lea.sflag (!%p324_p3), [#allocation3], %s2472_s24  ;;  %s2476_s23 = scalar_lea.vmem (!%p324_p3), [#allocation2], %s2051_s26 }
  0x38   : > { %2289 = dma.done.wait (%p2410_p6), %s330_s29, 128  }
  0x39   : > { %2291 = vsyncadd (%p2410_p6), %s330_s29, 4294967168  ;;  %p377_p11 = scmp.lt.s32.totalorder %s2388_s13, 1  ;;  %v2313_v0 = vmov 0   ;;  %s2873_s0 = sld [smem:[#allocation8_spill]]  ;;  %v397_v13 = vld [vmem:[%s2857_s3] sm:$0xff]  ;;  %v398_v14 = vld [vmem:[%s2857_s3 + $0x8] sm:$0xff] }
  0x3a   : > { %530 = vmatprep.mubr.bf16.mxu0 %v2313_v0  ;;  %2135 = vset.pattern.permute.xlu0 %v2313_v0  ;;  %v405_v15 = vld [vmem:[%s2858_s4] sm:$0xff]  ;;  %v407_v16 = vld [vmem:[%s2858_s4 + $0x10] sm:$0xff]  ;;  %v437_v17 = vpack.c.bf16 %v398_v14, %v397_v13  ;;  %v406_v18 = vld [vmem:[%s2858_s4 + $0x8] sm:$0xff]  ;;  %vm485_vm0 = vcmask 261120   ;;  %vm639_vm1 = vcmask 523264   ;;  %vm791_vm2 = vcmask 257024  }
  0x3b   : > { %s2486_s28 = scalar_select %p377_p11, %s2388_s13, 1  ;;  %2136 = vset.pattern.permute.xlu1 %v2313_v0  ;;  %684 = vmatprep.mubr.bf16.mxu1 %v2313_v0  ;;  %v408_v19 = vld [vmem:[%s2858_s4 + $0x18] sm:$0xff]  ;;  %v409_v20 = vld [vmem:[%s2858_s4 + $0x20] sm:$0xff]  ;;  %v410_v21 = vld [vmem:[%s2858_s4 + $0x28] sm:$0xff]  ;;  %vm857_vm5 = vcmask 1043456   ;;  %vm1219_vm12 = vcmask 1041408  }
  0x3c   : > { %447 = vperm.xlu0 %2135, %v405_v15   ;;  %457 = vperm.xlu1 %2136, %v407_v16   ;;  %v399_v22 = vld [vmem:[%s2857_s3 + $0x10] sm:$0xff]  ;;  %v400_v23 = vld [vmem:[%s2857_s3 + $0x18] sm:$0xff]  ;;  %v421_v27 = vld [vmem:[%s2860_s6] sm:$0xff]  ;;  %vm1212_vm13 = vcmask 31744   ;;  %s2052_s19 = sshll.u32 %s2472_s24, 6  ;;  %s2085_s26 = sshll.u32 %s2388_s13, 10 }
  0x3d   : > { %s2084_s14 = sshll.u32 %s2486_s28, 6  ;;  %v438_v24 = vpack.c.bf16 %v400_v23, %v399_v22  ;;  %v411_v25 = vld [vmem:[%s2858_s4 + $0x30] sm:$0xff]  ;;  %v412_v26 = vld [vmem:[%s2858_s4 + $0x38] sm:$0xff]  ;;  %v422_v28 = vld [vmem:[%s2860_s6 + $0x8] sm:$0xff]  ;;  %s376_s25 = scalar_lea.vmem [#allocation5], %s2052_s19 }
  0x3e   : > { %v401_v29 = vld [vmem:[%s2857_s3 + $0x20] sm:$0xff]  ;;  %v402_v30 = vld [vmem:[%s2857_s3 + $0x28] sm:$0xff]  ;;  %v423_v32 = vld [vmem:[%s2860_s6 + $0x10] sm:$0xff]  ;;  %s1947_s27 = sshll.u32 %s376_s25, 4  ;;  %s1934_s13 = scalar_lea.sflag [#allocation4], %s2472_s24  ;;  %s2805_s27 = int_to_ptr.vmem [resolvable:$true] %s1947_s27 }
  0x3f   : > { %s381_s20 = scalar_lea.vmem %s2873_s0, %s2084_s14  ;;  %v439_v31 = vpack.c.bf16 %v402_v30, %v401_v29  ;;  %v424_v33 = vld [vmem:[%s2860_s6 + $0x18] sm:$0xff]  ;;  %v425_v34 = vld [vmem:[%s2860_s6 + $0x20] sm:$0xff]  ;;  %v426_v35 = vld [vmem:[%s2860_s6 + $0x28] sm:$0xff]  ;;  %s2810_s14 = scalar_lea.hbm %s2863_s9, %s2085_s26 }
  0x40   : > { %v388_v1 = vld [vmem:[%s381_s20 + $0x8] sm:$0xff]  ;;  %v390_v2 = vld [vmem:[%s381_s20 + $0x18] sm:$0xff]  ;;  %v387_v3 = vld [vmem:[%s381_s20] sm:$0xff]  ;;  %452 = vperm.xlu0 %2135, %v406_v18   ;;  %462 = vperm.xlu1 %2136, %v408_v19   ;;  %p2874_p12 = scmp.ne.s32.totalorder %s2868_s21, 0 }
  0x41   : > { %v442_v4 = vpack.c.bf16 %v390_v2, %v388_v1  ;;  %v389_v5 = vld [vmem:[%s381_s20 + $0x10] sm:$0xff]  ;;  %v392_v6 = vld [vmem:[%s381_s20 + $0x28] sm:$0xff]  ;;  %v394_v7 = vld [vmem:[%s381_s20 + $0x38] sm:$0xff] }
  0x42   : > { %v441_v8 = vpack.c.bf16 %v389_v5, %v387_v3  ;;  %v444_v9 = vpack.c.bf16 %v394_v7, %v392_v6  ;;  %v391_v10 = vld [vmem:[%s381_s20 + $0x20] sm:$0xff]  ;;  %v393_v11 = vld [vmem:[%s381_s20 + $0x30] sm:$0xff]  ;;  %v404_v37 = vld [vmem:[%s2857_s3 + $0x38] sm:$0xff] }
  0x43   : > { %498 = vmatprep.subr.bf16.mxu0 %v442_v4  ;;  %v443_v12 = vpack.c.bf16 %v393_v11, %v391_v10  ;;  %v403_v36 = vld [vmem:[%s2857_s3 + $0x30] sm:$0xff]  ;;  %v428_v40 = vld [vmem:[%s2860_s6 + $0x38] sm:$0xff] }
  0x44   : > { %499 = vmatpush1.bf16.msra.mxu0 %v441_v8  ;;  %467 = vperm.xlu0 %2135, %v409_v20   ;;  %v440_v38 = vpack.c.bf16 %v404_v37, %v403_v36  ;;  %v427_v39 = vld [vmem:[%s2860_s6 + $0x30] sm:$0xff] }
  0x45   : > { %500 = vmatprep.subr.bf16.mxu0 %v444_v9  ;;  %472 = vperm.xlu1 %2136, %v410_v21  }
  0x48   : > { %501 = vmatpush1.bf16.msra.mxu0 %v443_v12  ;;  %477 = vperm.xlu0 %2135, %v411_v25  }
  0x49   : > { %482 = vperm.xlu1 %2136, %v412_v26  }
  0x4b   : > { %2056 = vmatmul.mubr.msk.bf16.vlgmr.msra.gmra.mrb[0].mxu0 %vm485_vm0, %v437_v17 }
  0x4c   : > { %540 = vmatprep.mubr.bf16.mxu0 %v2313_v0  ;;  %601 = vperm.xlu0 %2135, %v421_v27  }
  0x4d   : > { %606 = vperm.xlu1 %2136, %v422_v28  }
  0x50   : > { %611 = vperm.xlu0 %2135, %v423_v32  }
  0x51   : > { %616 = vperm.xlu1 %2136, %v424_v33  }
  0x53   : > { %2057 = vmatmul.mubr.msk.bf16.gmra.mrb[4].mxu0 %vm485_vm0, %v438_v24 }
  0x54   : > { %550 = vmatprep.mubr.bf16.mxu0 %v2313_v0  ;;  %621 = vperm.xlu0 %2135, %v425_v34  }
  0x55   : > { %626 = vperm.xlu1 %2136, %v426_v35  }
  0x58   : > { %631 = vperm.xlu0 %2135, %v427_v39  }
  0x59   : > { %636 = vperm.xlu1 %2136, %v428_v40  }
  0x5b   : > { %2058 = vmatmul.mubr.msk.bf16.gmra.mrb[8].mxu0 %vm485_vm0, %v439_v31 }
  0x5c   : > { %560 = vmatprep.mubr.bf16.mxu0 %v2313_v0 }
  0x63   : > { %2059 = vmatmul.mubr.msk.bf16.gmra.mrb[12].mxu0 %vm485_vm0, %v440_v38 }
  0xbb   : > { %v448_v41 = vpop.permute.xlu0 %447  ;;  %v458_v50 = vpop.permute.xlu1 %457 }
  0xbf   : > { %v453_v45 = vpop.permute.xlu0 %452  ;;  %v463_v61 = vpop.permute.xlu1 %462 }
  0xc3   : > { %v468_v9 = vpop.permute.xlu0 %467 }
  0xc4   : > { %v473_v14 = vpop.permute.xlu1 %472 }
  0xc7   : > { %v478_v25 = vpop.permute.xlu0 %477 }
  0xc8   : > { %v483_v30 = vpop.permute.xlu1 %482 }
 0x11e   : > { %v532_v42 = vpop.f32.mrb[0].mxu0 }
 0x11f   : > { %v533_v43 = vadd.f32 %v532_v42, %v448_v41  ;;  %v534_v44 = vpop.f32.mrb[1].mxu0  ;;  %v414_v42 = vld [vmem:[%s2859_s5 + $0x8] sm:$0xff] }
 0x120   : > { %v535_v46 = vadd.f32 %v534_v44, %v448_v41  ;;  %v536_v47 = vpop.f32.mrb[2].mxu0  ;;  %v413_v41 = vld [vmem:[%s2859_s5] sm:$0xff] }
 0x121   : > { %v537_v48 = vadd.f32 %v536_v47, %v453_v45  ;;  %v538_v49 = vpop.f32.mrb[3].mxu0  ;;  %v571_v52 = vmax.f32 %v533_v43, 0.0  ;;  %v587_v44 = vpack.c.bf16 %v414_v42, %v413_v41 }
 0x122   : > { %v539_v51 = vadd.f32 %v538_v49, %v453_v45  ;;  %v572_v54 = vmax.f32 %v535_v46, 0.0  ;;  %v415_v45 = vld [vmem:[%s2859_s5 + $0x10] sm:$0xff]  ;;  %v416_v46 = vld [vmem:[%s2859_s5 + $0x18] sm:$0xff]  ;;  %v418_v49 = vld [vmem:[%s2859_s5 + $0x28] sm:$0xff] }
 0x123   : > { %v573_v53 = vmax.f32 %v537_v48, 0.0  ;;  %v588_v47 = vpack.c.bf16 %v416_v46, %v415_v45  ;;  %v417_v48 = vld [vmem:[%s2859_s5 + $0x20] sm:$0xff] }
 0x124   : > { %v574_v55 = vmax.f32 %v539_v51, 0.0  ;;  %v419_v51 = vld [vmem:[%s2859_s5 + $0x30] sm:$0xff] }
 0x125   : > { %v591_v56 = vpack.c.bf16 %v573_v53, %v571_v52  ;;  %v420_v52 = vld [vmem:[%s2859_s5 + $0x38] sm:$0xff] }
 0x126   : > { %v542_v57 = vpop.f32.mrb[4].mxu0  ;;  %v592_v58 = vpack.c.bf16 %v574_v55, %v572_v54  ;;  %v590_v53 = vpack.c.bf16 %v420_v52, %v419_v51  ;;  %v2605_v54 = vld [vmem:[%s2476_s23] sm:$0xff]  ;;  %s2055_s23 = sshll.u32 %s2486_s28, 2  ;;  %s2314_s28 = smov [#allocation5]  }
 0x127   : > { %v543_v59 = vadd.f32 %v542_v57, %v458_v50  ;;  %v544_v60 = vpop.f32.mrb[5].mxu0  ;;  %v742_v55 = vcombine.high %v2605_v54, %v2605_v54  ;;  %v602_v57 = vpop.permute.xlu0 %601  ;;  %s385_s0 = scalar_lea.vmem %s2856_s2, %s2055_s23  ;;  %s2248_s16 = sshll.u32 %s2314_s28, 4  ;;  %s2249_s16 = int_to_ptr.vmem [resolvable:$false] %s2248_s16 }
 0x128   : > { %v545_v62 = vadd.f32 %v544_v60, %v458_v50  ;;  %v546_v63 = vpop.f32.mrb[6].mxu0  ;;  %652 = vmatprep.subr.bf16.mxu1 %v592_v58  ;;  %v589_v50 = vpack.c.bf16 %v418_v49, %v417_v48  ;;  %s2250_s17 = scalar_lea.vmem %s2249_s16, 2048  ;;  %p2251_p10 = scmp.lt.s32.totalorder %s2805_s27, %s2249_s16 }
 0x129   : > { %v547_v1 = vadd.f32 %v546_v63, %v463_v61  ;;  %v548_v2 = vpop.f32.mrb[7].mxu0  ;;  %653 = vmatpush1.bf16.msra.mxu1 %v591_v56  ;;  %v575_v4 = vmax.f32 %v543_v59, 0.0  ;;  %v745_v56 = vpack.c.bf16 %v742_v55, %v742_v55 }
 0x12a   : > { %v549_v3 = vadd.f32 %v548_v2, %v463_v61  ;;  %v576_v6 = vmax.f32 %v545_v62, 0.0  ;;  %v607_v61 = vpop.permute.xlu1 %606 }
 0x12b   : > { %v577_v5 = vmax.f32 %v547_v1, 0.0  ;;  %782 = vmatprep.mubr.bf16.mxu0 %v745_v56 }
 0x12c   : > { %v578_v7 = vmax.f32 %v549_v3, 0.0 }
 0x12d   : > { %v593_v8 = vpack.c.bf16 %v577_v5, %v575_v4 }
 0x12e   : > { %v594_v10 = vpack.c.bf16 %v578_v7, %v576_v6  ;;  %v552_v11 = vpop.f32.mrb[8].mxu0 }
 0x12f   : > { %v553_v12 = vadd.f32 %v552_v11, %v468_v9  ;;  %v554_v13 = vpop.f32.mrb[9].mxu0 }
 0x130   : > { %v555_v15 = vadd.f32 %v554_v13, %v468_v9  ;;  %v556_v16 = vpop.f32.mrb[10].mxu0  ;;  %654 = vmatprep.subr.bf16.mxu1 %v594_v10  ;;  %v612_v9 = vpop.permute.xlu0 %611 }
 0x131   : > { %v557_v17 = vadd.f32 %v556_v16, %v473_v14  ;;  %v558_v18 = vpop.f32.mrb[11].mxu0  ;;  %655 = vmatpush1.bf16.msra.mxu1 %v593_v8  ;;  %v579_v20 = vmax.f32 %v553_v12, 0.0 }
 0x132   : > { %v559_v19 = vadd.f32 %v558_v18, %v473_v14  ;;  %v580_v22 = vmax.f32 %v555_v15, 0.0  ;;  %v617_v14 = vpop.permute.xlu1 %616 }
 0x133   : > { %v581_v21 = vmax.f32 %v557_v17, 0.0 }
 0x134   : > { %v582_v23 = vmax.f32 %v559_v19, 0.0 }
 0x135   : > { %v595_v24 = vpack.c.bf16 %v581_v21, %v579_v20 }
 0x136   : > { %v596_v26 = vpack.c.bf16 %v582_v23, %v580_v22  ;;  %v562_v27 = vpop.f32.mrb[12].mxu0 }
 0x137   : > { %v563_v28 = vadd.f32 %v562_v27, %v478_v25  ;;  %v564_v29 = vpop.f32.mrb[13].mxu0 }
 0x138   : > { %v565_v31 = vadd.f32 %v564_v29, %v478_v25  ;;  %v566_v32 = vpop.f32.mrb[14].mxu0  ;;  %656 = vmatprep.subr.bf16.mxu1 %v596_v26  ;;  %v622_v25 = vpop.permute.xlu0 %621 }
 0x139   : > { %v567_v33 = vadd.f32 %v566_v32, %v483_v30  ;;  %v568_v34 = vpop.f32.mrb[15].mxu0  ;;  %657 = vmatpush1.bf16.msra.mxu1 %v595_v24  ;;  %v583_v36 = vmax.f32 %v563_v28, 0.0 }
 0x13a   : > { %v569_v35 = vadd.f32 %v568_v34, %v483_v30  ;;  %v584_v38 = vmax.f32 %v565_v31, 0.0  ;;  %v627_v30 = vpop.permute.xlu1 %626 }
 0x13b   : > { %v585_v37 = vmax.f32 %v567_v33, 0.0 }
 0x13c   : > { %v586_v39 = vmax.f32 %v569_v35, 0.0  ;;  %v632_v42 = vpop.permute.xlu0 %631 }
 0x13d   : > { %v597_v40 = vpack.c.bf16 %v585_v37, %v583_v36 }
 0x13e   : > { %v598_v43 = vpack.c.bf16 %v586_v39, %v584_v38 }
 0x140   : > { %658 = vmatprep.subr.bf16.mxu1 %v598_v43 }
 0x141   : > { %659 = vmatpush1.bf16.msra.mxu1 %v597_v40  ;;  %v744_v40 = vpack.c.bf16 %v2605_v54, %v2605_v54 }
 0x144   : > { %2060 = vmatmul.mubr.msk.bf16.vlgmr.msra.gmra.mrb[0].mxu1 %vm639_vm1, %v587_v44 }
 0x145   : > { %694 = vmatprep.mubr.bf16.mxu1 %v2313_v0 }
 0x14c   : > { %2061 = vmatmul.mubr.msk.bf16.gmra.mrb[4].mxu1 %vm639_vm1, %v588_v47  ;;  %v637_v47 = vpop.permute.xlu1 %636 }
 0x14d   : > { %704 = vmatprep.mubr.bf16.mxu1 %v2313_v0 }
 0x154   : > { %2062 = vmatmul.mubr.msk.bf16.gmra.mrb[8].mxu1 %vm639_vm1, %v589_v50 }
 0x155   : > { %714 = vmatprep.mubr.bf16.mxu1 %v2313_v0 }
 0x15c   : > { %2063 = vmatmul.mubr.msk.bf16.gmra.mrb[12].mxu1 %vm639_vm1, %v590_v53 }
 0x217   : > { %v686_v58 = vpop.f32.mrb[0].mxu1 }
 0x218   : > { %v687_v59 = vadd.f32 %v686_v58, %v602_v57  ;;  %v688_v60 = vpop.f32.mrb[1].mxu1 }
 0x219   : > { %v689_v62 = vadd.f32 %v688_v60, %v602_v57  ;;  %v690_v63 = vpop.f32.mrb[2].mxu1 }
 0x21a   : > { %v691_v1 = vadd.f32 %v690_v63, %v607_v61  ;;  %v692_v2 = vpop.f32.mrb[3].mxu1  ;;  %v725_v4 = vmax.f32 %v687_v59, 0.0 }
 0x21b   : > { %v693_v3 = vadd.f32 %v692_v2, %v607_v61  ;;  %v726_v6 = vmax.f32 %v689_v62, 0.0 }
 0x21c   : > { %v727_v5 = vmax.f32 %v691_v1, 0.0 }
 0x21d   : > { %v728_v7 = vmax.f32 %v693_v3, 0.0 }
 0x21e   : > { %v2609_v8 = vpack.c.bf16 %v727_v5, %v725_v4 }
 0x21f   : > { %v2611_v10 = vpack.c.bf16 %v728_v7, %v726_v6  ;;  %v696_v11 = vpop.f32.mrb[4].mxu1 }
 0x220   : > { %v697_v12 = vadd.f32 %v696_v11, %v612_v9  ;;  %v698_v13 = vpop.f32.mrb[5].mxu1 }
 0x221   : > { %v699_v15 = vadd.f32 %v698_v13, %v612_v9  ;;  %v700_v16 = vpop.f32.mrb[6].mxu1  ;;  %750 = vmatprep.subr.bf16.mxu0 %v2611_v10  ;;  %900 = vmatprep.subr.bf16.mxu1 %v2611_v10 }
 0x222   : > { %v701_v17 = vadd.f32 %v700_v16, %v617_v14  ;;  %v702_v18 = vpop.f32.mrb[7].mxu1  ;;  %751 = vmatpush1.bf16.xpose.msra.mxu0 %v2609_v8  ;;  %901 = vmatpush1.bf16.xpose.msra.mxu1 %v2609_v8  ;;  %v729_v20 = vmax.f32 %v697_v12, 0.0 }
 0x223   : > { %v703_v19 = vadd.f32 %v702_v18, %v617_v14  ;;  %v730_v22 = vmax.f32 %v699_v15, 0.0 }
 0x224   : > { %v731_v21 = vmax.f32 %v701_v17, 0.0 }
 0x225   : > { %v732_v23 = vmax.f32 %v703_v19, 0.0 }
 0x226   : > { %v2617_v24 = vpack.c.bf16 %v731_v21, %v729_v20 }
 0x227   : > { %v2619_v26 = vpack.c.bf16 %v732_v23, %v730_v22  ;;  %v706_v27 = vpop.f32.mrb[8].mxu1 }
 0x228   : > { %v707_v28 = vadd.f32 %v706_v27, %v622_v25  ;;  %v708_v29 = vpop.f32.mrb[9].mxu1 }
 0x229   : > { %v709_v31 = vadd.f32 %v708_v29, %v622_v25  ;;  %v710_v32 = vpop.f32.mrb[10].mxu1  ;;  %752 = vmatprep.subr.bf16.mxu0 %v2619_v26  ;;  %902 = vmatprep.subr.bf16.mxu1 %v2619_v26 }
 0x22a   : > { %v711_v33 = vadd.f32 %v710_v32, %v627_v30  ;;  %v712_v34 = vpop.f32.mrb[11].mxu1  ;;  %753 = vmatpush1.bf16.xpose.msra.mxu0 %v2617_v24  ;;  %903 = vmatpush1.bf16.xpose.msra.mxu1 %v2617_v24  ;;  %v733_v36 = vmax.f32 %v707_v28, 0.0 }
 0x22b   : > { %v713_v35 = vadd.f32 %v712_v34, %v627_v30  ;;  %814 = vmatprep.subr.bf16.mxu0 %v2611_v10  ;;  %1048 = vmatprep.subr.bf16.mxu1 %v2611_v10  ;;  %v734_v38 = vmax.f32 %v709_v31, 0.0 }
 0x22c   : > { %v735_v37 = vmax.f32 %v711_v33, 0.0 }
 0x22d   : > { %v736_v39 = vmax.f32 %v713_v35, 0.0 }
 0x22e   : > { %v2629_v41 = vpack.c.bf16 %v735_v37, %v733_v36 }
 0x22f   : > { %v2631_v43 = vpack.c.bf16 %v736_v39, %v734_v38  ;;  %v716_v44 = vpop.f32.mrb[12].mxu1 }
 0x230   : > { %v717_v45 = vadd.f32 %v716_v44, %v632_v42  ;;  %v718_v46 = vpop.f32.mrb[13].mxu1 }
 0x231   : > { %v719_v48 = vadd.f32 %v718_v46, %v632_v42  ;;  %v720_v49 = vpop.f32.mrb[14].mxu1  ;;  %783 = vmatmul.mubr.bf16.vlgmr.msra.gmra.mrb[16].mxu0 %v744_v40 }
 0x232   : > { %v721_v50 = vadd.f32 %v720_v49, %v637_v47  ;;  %v722_v51 = vpop.f32.mrb[15].mxu1  ;;  %815 = vmatpush1.bf16.msra.mxu0 %v2609_v8  ;;  %846 = vmatprep.mubr.bf16.mxu0 %v2313_v0  ;;  %v737_v53 = vmax.f32 %v717_v45, 0.0 }
 0x233   : > { %v723_v52 = vadd.f32 %v722_v51, %v637_v47  ;;  %816 = vmatprep.subr.bf16.mxu0 %v2619_v26  ;;  %v738_v55 = vmax.f32 %v719_v48, 0.0 }
 0x234   : > { %v739_v54 = vmax.f32 %v721_v50, 0.0 }
 0x235   : > { %v740_v56 = vmax.f32 %v723_v52, 0.0 }
 0x236   : > { %v2636_v57 = vpack.c.bf16 %v739_v54, %v737_v53  ;;  %817 = vmatpush1.bf16.msra.mxu0 %v2617_v24 }
 0x237   : > { %v2639_v58 = vpack.c.bf16 %v740_v56, %v738_v55  ;;  %963 = vmatprep.subr.bf16.mxu0 %v2611_v10 }
 0x304   : > { %v784_v59 = vpop.f32.mrb[16].mxu0 }
 0x305   : > { %v790_v60 = vmul.f32 %v784_v59, %v784_v59  ;;  %v786_v61 = vpop.f32.mrb[17].mxu0 }
 0x306   : > { %v787_v62 = vpop.f32.mrb[18].mxu0 }
 0x307   : > { %v792_v63 = vsel %vm791_vm2, %v790_v60, 0.0  ;;  %v788_v1 = vpop.f32.mrb[19].mxu0 }
 0x308   : > { %v793_v2 = vrot.slane %v792_v63, 4 }
 0x30a   : > { %v794_v3 = vadd.f32 %v793_v2, %v792_v63 }
 0x30c   : > { %v795_v4 = vrot.slane %v794_v3, 2 }
 0x30e   : > { %v796_v5 = vadd.f32 %v795_v4, %v794_v3 }
 0x310   : > { %v797_v6 = vrot.slane %v796_v5, 1 }
 0x312   : > { %v798_v7 = vadd.f32 %v797_v6, %v796_v5 }
 0x314   : > { %2138 = vrsqrt.f32 %v798_v7  ;;  %vm801_vm3 = vcmp.eq.f32.partialorder %v798_v7, inf  ;;  %v804_v12 = vand.u32 2147483648, %v798_v7  ;;  %vm803_vm4 = vcmp.eq.f32.partialorder %v798_v7, 0.0 }
 0x31e   : > { %v2139_v9 = vpop.eup %2138 }
 0x31f   : > { %v800_v11 = vmul.f32 %v2139_v9, %v798_v7 }
 0x321   : > { %v802_v13 = vsel %vm801_vm3, %v798_v7, %v800_v11 }
 0x322   : > { %v805_v14 = vsel %vm803_vm4, %v804_v12, %v802_v13 }
 0x323   : > { %v806_v15 = vadd.f32 1e-08, %v805_v14 }
 0x325   : > { %2140 = vrcp.f32 %v806_v15 }
 0x32f   : > { %v2141_v16 = vpop.eup %2140 }
 0x330   : > { %v809_v17 = vmul.f32 %v2141_v16, %v784_v59 }
 0x332   : > { %v810_v18 = vpack.c.bf16 %v809_v17, %v809_v17 }
 0x334   : > { %2064 = vmatmul.mubr.msk.bf16.vlgmr.msra.gmra.mrb[20].mxu0 %vm485_vm0, %v810_v18 }
 0x335   : > { %964 = vmatpush1.bf16.msra.mxu0 %v2609_v8  ;;  %995 = vmatprep.mubr.bf16.mxu0 %v2313_v0 }
 0x336   : > { %965 = vmatprep.subr.bf16.mxu0 %v2619_v26 }
 0x339   : > { %966 = vmatpush1.bf16.msra.mxu0 %v2617_v24 }
 0x33a   : > { %1111 = vmatprep.subr.bf16.mxu0 %v2611_v10 }
 0x407   : > { %v848_v19 = vpop.f32.mrb[20].mxu0 }
 0x408   : > { %v855_v20 = vmul.f32 0.17677669, %v848_v19  ;;  %v850_v21 = vpop.f32.mrb[21].mxu0 }
 0x409   : > { %v856_v22 = vmul.f32 0.17677669, %v850_v21  ;;  %v852_v23 = vpop.f32.mrb[22].mxu0 }
 0x40a   : > { %v858_v25 = vsel %vm857_vm5, %v855_v20, -inf  ;;  %v853_v27 = vpop.f32.mrb[23].mxu0 }
 0x40b   : > { %v859_v28 = vrot.slane %v858_v25, 4  ;;  %v865_v29 = vsel %vm857_vm5, %v856_v22, -inf }
 0x40c   : > { %v866_v30 = vrot.slane %v865_v29, 4 }
 0x40d   : > { %v860_v31 = vmax.f32 %v858_v25, %v859_v28 }
 0x40e   : > { %v867_v32 = vmax.f32 %v865_v29, %v866_v30 }
 0x40f   : > { %v861_v33 = vrot.slane %v860_v31, 2 }
 0x410   : > { %v868_v34 = vrot.slane %v867_v32, 2 }
 0x411   : > { %v862_v35 = vmax.f32 %v860_v31, %v861_v33 }
 0x412   : > { %v869_v36 = vmax.f32 %v867_v32, %v868_v34  ;;  %v2667_v32 = vld [vmem:[%s385_s0] sm:$0xf]  ;;  %s2244_s0 = scalar_lea.vmem %s2805_s27, 1024 }
 0x413   : > { %v863_v10 = vrot.slane %v862_v35, 1  ;;  %v1279_v33 = vmul.f32 %v2667_v32, %v2667_v32  ;;  %p2245_p6 = scmp.ne.s32.totalorder %s2805_s27, %s2244_s0  ;;  %p2252_p2 = scmp.lt.s32.totalorder %s2250_s17, %s2244_s0 }
 0x414   : > { %v870_v37 = vrot.slane %v869_v36, 1 }
 0x415   : > { %v864_v38 = vmax.f32 %v862_v35, %v863_v10  ;;  %v1280_v34 = vsel %vm791_vm2, %v1279_v33, 0.0  ;;  %p2246_p13 = pnand %p2245_p6, %p2874_p12  ;;  %p2253_p4 = por %p2252_p2, %p2251_p10 }
 0x416   : > { %v871_v39 = vmax.f32 %v869_v36, %v870_v37  ;;  %v1281_v35 = vrot.slane %v1280_v34, 4 }
 0x417   : > { %v872_v40 = vsub.f32 %v855_v20, %v864_v38  ;;  %p2247_p7 = pneg %p2246_p13 }
 0x418   : > { %v873_v42 = vsub.f32 %v856_v22, %v871_v39 }
 0x419   : > { %v874_v44 = vmul.f32 1.442695, %v872_v40  ;;  %p2254_p5 = pnand %p2253_p4, %p2247_p7 }
 0x41a   : > { %v876_v45 = vmul.f32 1.442695, %v873_v42 }
 0x41b   : > { %2142 = vpow2.f32 %v874_v44 }
 0x41c   : > { %2144 = vpow2.f32 %v876_v45 }
 0x425   : > { %v2143_v46 = vpop.eup %2142 }
 0x426   : > { %v2145_v47 = vpop.eup %2144  ;;  %v878_v48 = vsel %vm857_vm5, %v2143_v46, 0.0 }
 0x427   : > { %v879_v49 = vrot.slane %v878_v48, 4  ;;  %v885_v50 = vsel %vm857_vm5, %v2145_v47, 0.0 }
 0x428   : > { %v886_v51 = vrot.slane %v885_v50, 4 }
 0x429   : > { %v880_v52 = vadd.f32 %v879_v49, %v878_v48 }
 0x42a   : > { %v887_v53 = vadd.f32 %v886_v51, %v885_v50 }
 0x42b   : > { %v881_v54 = vrot.slane %v880_v52, 2 }
 0x42c   : > { %v888_v55 = vrot.slane %v887_v53, 2 }
 0x42d   : > { %v882_v56 = vadd.f32 %v881_v54, %v880_v52 }
 0x42e   : > { %v889_v59 = vadd.f32 %v888_v55, %v887_v53 }
 0x42f   : > { %v883_v60 = vrot.slane %v882_v56, 1 }
 0x430   : > { %v890_v61 = vrot.slane %v889_v59, 1 }
 0x431   : > { %v884_v62 = vadd.f32 %v883_v60, %v882_v56 }
 0x432   : > { %v891_v63 = vadd.f32 %v890_v61, %v889_v59 }
 0x433   : > { %2146 = vrcp.f32 %v884_v62 }
 0x434   : > { %2148 = vrcp.f32 %v891_v63 }
 0x43d   : > { %v2147_v1 = vpop.eup %2146 }
 0x43e   : > { %v2149_v2 = vpop.eup %2148  ;;  %v896_v3 = vmul.f32 %v2147_v1, %v2143_v46 }
 0x43f   : > { %v897_v4 = vmul.f32 %v2149_v2, %v2145_v47 }
 0x440   : > { %v898_v6 = vpack.c.bf16 %v896_v3, %v896_v3 }
 0x441   : > { %v899_v5 = vpack.c.bf16 %v897_v4, %v897_v4 }
 0x443   : > { %932 = vmatprep.mubr.bf16.mxu1 %v899_v5 }
 0x444   : > { %933 = vmatmul.mubr.bf16.vlgmr.msra.gmra.mrb[16].mxu1 %v898_v6 }
 0x445   : > { %1049 = vmatpush1.bf16.xpose.msra.mxu1 %v2609_v8 }
 0x446   : > { %1050 = vmatprep.subr.bf16.mxu1 %v2619_v26 }
 0x44d   : > { %1051 = vmatpush1.bf16.xpose.msra.mxu1 %v2617_v24 }
 0x44e   : > { %1306 = vmatprep.subr.bf16.mxu1 %v2631_v43 }
 0x517   : > { %v934_v7 = vpop.f32.mrb[16].mxu1 }
 0x518   : > { %v940_v9 = vmul.f32 %v934_v7, %v934_v7  ;;  %v936_v11 = vpop.f32.mrb[17].mxu1 }
 0x519   : > { %v937_v12 = vpop.f32.mrb[18].mxu1 }
 0x51a   : > { %v941_v13 = vsel %vm791_vm2, %v940_v9, 0.0  ;;  %v938_v14 = vpop.f32.mrb[19].mxu1 }
 0x51b   : > { %v942_v15 = vrot.slane %v941_v13, 4 }
 0x51d   : > { %v943_v16 = vadd.f32 %v942_v15, %v941_v13 }
 0x51f   : > { %v944_v17 = vrot.slane %v943_v16, 2 }
 0x521   : > { %v945_v18 = vadd.f32 %v944_v17, %v943_v16 }
 0x523   : > { %v946_v19 = vrot.slane %v945_v18, 1 }
 0x525   : > { %v947_v20 = vadd.f32 %v946_v19, %v945_v18 }
 0x527   : > { %2150 = vrsqrt.f32 %v947_v20  ;;  %vm950_vm6 = vcmp.eq.f32.partialorder %v947_v20, inf  ;;  %v953_v23 = vand.u32 2147483648, %v947_v20  ;;  %vm952_vm7 = vcmp.eq.f32.partialorder %v947_v20, 0.0 }
 0x531   : > { %v2151_v21 = vpop.eup %2150 }
 0x532   : > { %v949_v22 = vmul.f32 %v2151_v21, %v947_v20 }
 0x534   : > { %v951_v25 = vsel %vm950_vm6, %v947_v20, %v949_v22 }
 0x535   : > { %v954_v27 = vsel %vm952_vm7, %v953_v23, %v951_v25 }
 0x536   : > { %v955_v28 = vadd.f32 1e-08, %v954_v27 }
 0x538   : > { %2152 = vrcp.f32 %v955_v28 }
 0x542   : > { %v2153_v29 = vpop.eup %2152 }
 0x543   : > { %v958_v30 = vmul.f32 %v2153_v29, %v934_v7 }
 0x545   : > { %v959_v31 = vpack.c.bf16 %v958_v30, %v958_v30 }
 0x547   : > { %2065 = vmatmul.mubr.msk.bf16.vlgmr.msra.gmra.mrb[24].mxu0 %vm485_vm0, %v959_v31 }
 0x548   : > { %1112 = vmatpush1.bf16.msra.mxu0 %v2609_v8  ;;  %1143 = vmatprep.mubr.bf16.mxu0 %v2313_v0  ;;  %v1282_v8 = vadd.f32 %v1281_v35, %v1280_v34 }
 0x549   : > { %1113 = vmatprep.subr.bf16.mxu0 %v2619_v26 }
 0x54a   : > { %v1283_v40 = vrot.slane %v1282_v8, 2 }
 0x54c   : > { %1114 = vmatpush1.bf16.msra.mxu0 %v2617_v24  ;;  %v1284_v48 = vadd.f32 %v1283_v40, %v1282_v8 }
 0x54e   : > { %v1285_v53 = vrot.slane %v1284_v48, 1 }
 0x550   : > { %v1286_v60 = vadd.f32 %v1285_v53, %v1284_v48 }
 0x552   : > { %2154 = vrsqrt.f32 %v1286_v60  ;;  %vm1289_vm8 = vcmp.eq.f32.partialorder %v1286_v60, inf  ;;  %v1292_v16 = vand.u32 2147483648, %v1286_v60  ;;  %vm1291_vm9 = vcmp.eq.f32.partialorder %v1286_v60, 0.0 }
 0x55c   : > { %v2155_v2 = vpop.eup %2154 }
 0x55d   : > { %v1288_v12 = vmul.f32 %v2155_v2, %v1286_v60 }
 0x55f   : > { %v1290_v18 = vsel %vm1289_vm8, %v1286_v60, %v1288_v12 }
 0x560   : > { %v1293_v22 = vsel %vm1291_vm9, %v1292_v16, %v1290_v18 }
 0x561   : > { %v1294_v27 = vadd.f32 1e-08, %v1293_v22 }
 0x61a   : > { %v997_v36 = vpop.f32.mrb[24].mxu0 }
 0x61b   : > { %v1004_v10 = vmul.f32 0.17677669, %v997_v36  ;;  %v999_v37 = vpop.f32.mrb[25].mxu0 }
 0x61c   : > { %v1005_v26 = vmul.f32 0.17677669, %v999_v37  ;;  %v1001_v38 = vpop.f32.mrb[26].mxu0 }
 0x61d   : > { %v1006_v24 = vsel %vm857_vm5, %v1004_v10, -inf  ;;  %v1002_v39 = vpop.f32.mrb[27].mxu0 }
 0x61e   : > { %v1007_v42 = vrot.slane %v1006_v24, 4  ;;  %v1013_v44 = vsel %vm857_vm5, %v1005_v26, -inf }
 0x61f   : > { %v1014_v45 = vrot.slane %v1013_v44, 4 }
 0x620   : > { %v1008_v46 = vmax.f32 %v1006_v24, %v1007_v42 }
 0x621   : > { %v1015_v47 = vmax.f32 %v1013_v44, %v1014_v45 }
 0x622   : > { %v1009_v49 = vrot.slane %v1008_v46, 2 }
 0x623   : > { %v1016_v50 = vrot.slane %v1015_v47, 2 }
 0x624   : > { %v1010_v51 = vmax.f32 %v1008_v46, %v1009_v49 }
 0x625   : > { %v1017_v52 = vmax.f32 %v1015_v47, %v1016_v50 }
 0x626   : > { %v1011_v54 = vrot.slane %v1010_v51, 1 }
 0x627   : > { %v1018_v55 = vrot.slane %v1017_v52, 1 }
 0x628   : > { %v1012_v56 = vmax.f32 %v1010_v51, %v1011_v54 }
 0x629   : > { %v1019_v59 = vmax.f32 %v1017_v52, %v1018_v55 }
 0x62a   : > { %v1020_v61 = vsub.f32 %v1004_v10, %v1012_v56  ;;  %v433_v56 = vld [vmem:[%s2862_s8] sm:$0xff] }
 0x62b   : > { %v1021_v62 = vsub.f32 %v1005_v26, %v1019_v59  ;;  %v435_v59 = vld [vmem:[%s2862_s8 + $0x10] sm:$0xff] }
 0x62c   : > { %v1022_v63 = vmul.f32 1.442695, %v1020_v61 }
 0x62d   : > { %v1024_v1 = vmul.f32 1.442695, %v1021_v62 }
 0x62e   : > { %2156 = vpow2.f32 %v1022_v63 }
 0x62f   : > { %2158 = vpow2.f32 %v1024_v1 }
 0x638   : > { %v2157_v3 = vpop.eup %2156 }
 0x639   : > { %v2159_v4 = vpop.eup %2158  ;;  %v1026_v5 = vsel %vm857_vm5, %v2157_v3, 0.0 }
 0x63a   : > { %v1027_v6 = vrot.slane %v1026_v5, 4  ;;  %v1033_v7 = vsel %vm857_vm5, %v2159_v4, 0.0 }
 0x63b   : > { %v1034_v9 = vrot.slane %v1033_v7, 4 }
 0x63c   : > { %v1028_v11 = vadd.f32 %v1027_v6, %v1026_v5 }
 0x63d   : > { %v1035_v13 = vadd.f32 %v1034_v9, %v1033_v7 }
 0x63e   : > { %v1029_v14 = vrot.slane %v1028_v11, 2 }
 0x63f   : > { %v1036_v15 = vrot.slane %v1035_v13, 2 }
 0x640   : > { %v1030_v17 = vadd.f32 %v1029_v14, %v1028_v11 }
 0x641   : > { %v1037_v19 = vadd.f32 %v1036_v15, %v1035_v13 }
 0x642   : > { %v1031_v20 = vrot.slane %v1030_v17, 1 }
 0x643   : > { %v1038_v21 = vrot.slane %v1037_v19, 1 }
 0x644   : > { %v1032_v23 = vadd.f32 %v1031_v20, %v1030_v17 }
 0x645   : > { %v1039_v25 = vadd.f32 %v1038_v21, %v1037_v19 }
 0x646   : > { %2160 = vrcp.f32 %v1032_v23 }
 0x647   : > { %2162 = vrcp.f32 %v1039_v25 }
 0x648   : > { %2164 = vrcp.f32 %v1294_v27 }
 0x650   : > { %v2161_v28 = vpop.eup %2160 }
 0x651   : > { %v2163_v29 = vpop.eup %2162  ;;  %v1044_v30 = vmul.f32 %v2161_v28, %v2157_v3 }
 0x652   : > { %v1045_v31 = vmul.f32 %v2163_v29, %v2159_v4  ;;  %v2165_v33 = vpop.eup %2164 }
 0x653   : > { %v1046_v35 = vpack.c.bf16 %v1044_v30, %v1044_v30  ;;  %v1297_v8 = vmul.f32 %v2165_v33, %v2667_v32 }
 0x654   : > { %v1047_v34 = vpack.c.bf16 %v1045_v31, %v1045_v31 }
 0x655   : > { %v1298_v36 = vpack.c.bf16 %v1297_v8, %v1297_v8 }
 0x656   : > { %1080 = vmatprep.mubr.bf16.mxu1 %v1047_v34 }
 0x657   : > { %1081 = vmatmul.mubr.bf16.vlgmr.msra.gmra.mrb[20].mxu1 %v1046_v35 }
 0x658   : > { %1307 = vmatpush1.bf16.msra.mxu1 %v2629_v41  ;;  %1338 = vmatprep.mubr.bf16.mxu1 %v2313_v0 }
 0x659   : > { %1308 = vmatprep.subr.bf16.mxu1 %v2639_v58 }
 0x65c   : > { %1309 = vmatpush1.bf16.msra.mxu1 %v2636_v57 }
 0x65d   : > { %1539 = vmatprep.subr.bf16.mxu1 %v2631_v43 }
 0x65f   : > { %2070 = vmatmul.mubr.msk.bf16.vlgmr.msra.gmra.mrb[24].mxu1 %vm485_vm0, %v1298_v36 }
 0x665   : > { %1540 = vmatpush1.bf16.xpose.msra.mxu1 %v2629_v41 }
 0x666   : > { %1541 = vmatprep.subr.bf16.mxu1 %v2639_v58 }
 0x66d   : > { %1542 = vmatpush1.bf16.xpose.msra.mxu1 %v2636_v57 }
 0x72a   : > { %v1082_v32 = vpop.f32.mrb[20].mxu1 }
 0x72b   : > { %v1088_v10 = vmul.f32 %v1082_v32, %v1082_v32  ;;  %v1084_v37 = vpop.f32.mrb[21].mxu1 }
 0x72c   : > { %v1085_v26 = vpop.f32.mrb[22].mxu1 }
 0x72d   : > { %v1089_v38 = vsel %vm791_vm2, %v1088_v10, 0.0  ;;  %v1086_v24 = vpop.f32.mrb[23].mxu1 }
 0x72e   : > { %v1090_v39 = vrot.slane %v1089_v38, 4 }
 0x730   : > { %v1091_v40 = vadd.f32 %v1090_v39, %v1089_v38 }
 0x732   : > { %v1092_v42 = vrot.slane %v1091_v40, 2  ;;  %v1340_v60 = vpop.f32.mrb[24].mxu1 }
 0x733   : > { %v1342_v61 = vpop.f32.mrb[25].mxu1  ;;  %v1347_v5 = vmul.f32 0.17677669, %v1340_v60 }
 0x734   : > { %v1093_v44 = vadd.f32 %v1092_v42, %v1091_v40  ;;  %v1344_v62 = vpop.f32.mrb[26].mxu1  ;;  %v1348_v1 = vmul.f32 0.17677669, %v1342_v61 }
 0x735   : > { %v1345_v63 = vpop.f32.mrb[27].mxu1  ;;  %v1349_v7 = vsel %vm857_vm5, %v1347_v5, -inf }
 0x736   : > { %v1094_v45 = vrot.slane %v1093_v44, 1  ;;  %v1356_v2 = vsel %vm857_vm5, %v1348_v1, -inf  ;;  %v1350_v9 = vrot.slane %v1349_v7, 4 }
 0x737   : > { %v1357_v3 = vrot.slane %v1356_v2, 4 }
 0x738   : > { %v1095_v46 = vadd.f32 %v1094_v45, %v1093_v44  ;;  %v1351_v12 = vmax.f32 %v1349_v7, %v1350_v9 }
 0x739   : > { %v1358_v4 = vmax.f32 %v1356_v2, %v1357_v3 }
 0x73a   : > { %2166 = vrsqrt.f32 %v1095_v46  ;;  %vm1098_vm10 = vcmp.eq.f32.partialorder %v1095_v46, inf  ;;  %v1101_v49 = vand.u32 2147483648, %v1095_v46  ;;  %vm1100_vm11 = vcmp.eq.f32.partialorder %v1095_v46, 0.0 }
 0x73b   : > { %v1359_v6 = vrot.slane %v1358_v4, 2  ;;  %v1352_v19 = vrot.slane %v1351_v12, 2 }
 0x73d   : > { %v1360_v11 = vmax.f32 %v1358_v4, %v1359_v6  ;;  %v1353_v29 = vmax.f32 %v1351_v12, %v1352_v19 }
 0x73f   : > { %v1361_v13 = vrot.slane %v1360_v11, 1  ;;  %v1354_v8 = vrot.slane %v1353_v29, 1 }
 0x741   : > { %v1362_v20 = vmax.f32 %v1360_v11, %v1361_v13  ;;  %v1355_v38 = vmax.f32 %v1353_v29, %v1354_v8 }
 0x743   : > { %v1364_v30 = vsub.f32 %v1348_v1, %v1362_v20  ;;  %v1363_v44 = vsub.f32 %v1347_v5, %v1355_v38 }
 0x744   : > { %v2167_v47 = vpop.eup %2166 }
 0x745   : > { %v1097_v48 = vmul.f32 %v2167_v47, %v1095_v46  ;;  %v1367_v36 = vmul.f32 1.442695, %v1364_v30 }
 0x747   : > { %v1099_v50 = vsel %vm1098_vm10, %v1095_v46, %v1097_v48  ;;  %v1365_v46 = vmul.f32 1.442695, %v1363_v44 }
 0x748   : > { %v1102_v51 = vsel %vm1100_vm11, %v1101_v49, %v1099_v50 }
 0x749   : > { %v1103_v52 = vadd.f32 1e-08, %v1102_v51 }
 0x74b   : > { %2168 = vrcp.f32 %v1103_v52 }
 0x74c   : > { %2170 = vpow2.f32 %v1367_v36 }
 0x755   : > { %v2169_v53 = vpop.eup %2168 }
 0x756   : > { %v1106_v54 = vmul.f32 %v2169_v53, %v1082_v32  ;;  %v2171_v47 = vpop.eup %2170 }
 0x757   : > { %v1376_v48 = vsel %vm857_vm5, %v2171_v47, 0.0 }
 0x758   : > { %v1107_v55 = vpack.c.bf16 %v1106_v54, %v1106_v54  ;;  %v1377_v50 = vrot.slane %v1376_v48, 4 }
 0x75a   : > { %1196 = vxpose.xlu0.c.b16.start.end [1/1] (short) (narrow) %v1107_v55, 32  ;;  %2066 = vmatmul.mubr.msk.bf16.vlgmr.msra.gmra.mrb[28].mxu0 %vm485_vm0, %v1107_v55 }
 0x75b   : > { %1258 = vmatprep.mubr.bf16.mxu0 %v2313_v0 }
 0x767   : > { %1840 = vperm.xlu0 %2135, %v433_v56  }
 0x76b   : > { %1850 = vperm.xlu0 %2135, %v435_v59   ;;  %v1378_v59 = vadd.f32 %v1377_v50, %v1376_v48 }
 0x76d   : > { %v1379_v2 = vrot.slane %v1378_v59, 2 }
 0x76f   : > { %v1380_v9 = vadd.f32 %v1379_v2, %v1378_v59 }
 0x7c0   : > { %v1204_v29 = vpop.trf.xlu0 }
 0x82d   : > { %v1145_v14 = vpop.f32.mrb[28].mxu0 }
 0x82e   : > { %v1152_v15 = vmul.f32 0.17677669, %v1145_v14  ;;  %v1147_v16 = vpop.f32.mrb[29].mxu0  ;;  %v1381_v14 = vrot.slane %v1380_v9, 1 }
 0x82f   : > { %v1153_v17 = vmul.f32 0.17677669, %v1147_v16  ;;  %v1149_v18 = vpop.f32.mrb[30].mxu0 }
 0x830   : > { %v1154_v21 = vsel %vm857_vm5, %v1152_v15, -inf  ;;  %v1150_v22 = vpop.f32.mrb[31].mxu0  ;;  %v1382_v16 = vadd.f32 %v1381_v14, %v1380_v9 }
 0x831   : > { %v1155_v23 = vrot.slane %v1154_v21, 4  ;;  %v1161_v25 = vsel %vm857_vm5, %v1153_v17, -inf }
 0x832   : > { %v1162_v27 = vrot.slane %v1161_v25, 4 }
 0x833   : > { %v1156_v28 = vmax.f32 %v1154_v21, %v1155_v23 }
 0x834   : > { %v1163_v31 = vmax.f32 %v1161_v25, %v1162_v27 }
 0x835   : > { %v1157_v33 = vrot.slane %v1156_v28, 2 }
 0x836   : > { %v1164_v34 = vrot.slane %v1163_v31, 2 }
 0x837   : > { %v1158_v35 = vmax.f32 %v1156_v28, %v1157_v33  ;;  %v1205_v33 = vpop.trf.xlu0 }
 0x838   : > { %v1165_v32 = vmax.f32 %v1163_v31, %v1164_v34 }
 0x839   : > { %v1159_v10 = vrot.slane %v1158_v35, 1 }
 0x83a   : > { %v1166_v37 = vrot.slane %v1165_v32, 1 }
 0x83b   : > { %v1160_v26 = vmax.f32 %v1158_v35, %v1159_v10 }
 0x83c   : > { %v1167_v24 = vmax.f32 %v1165_v32, %v1166_v37 }
 0x83d   : > { %v1168_v39 = vsub.f32 %v1152_v15, %v1160_v26 }
 0x83e   : > { %v1169_v40 = vsub.f32 %v1153_v17, %v1167_v24 }
 0x83f   : > { %v1170_v42 = vmul.f32 1.442695, %v1168_v39 }
 0x840   : > { %v1172_v45 = vmul.f32 1.442695, %v1169_v40 }
 0x841   : > { %2172 = vpow2.f32 %v1170_v42 }
 0x842   : > { %2174 = vpow2.f32 %v1172_v45 }
 0x843   : > { %2176 = vpow2.f32 %v1365_v46 }
 0x84b   : > { %v2173_v49 = vpop.eup %2172 }
 0x84c   : > { %v2175_v51 = vpop.eup %2174  ;;  %v1174_v52 = vsel %vm857_vm5, %v2173_v49, 0.0 }
 0x84d   : > { %v1175_v53 = vrot.slane %v1174_v52, 4  ;;  %v1181_v54 = vsel %vm857_vm5, %v2175_v51, 0.0  ;;  %v2177_v61 = vpop.eup %2176 }
 0x84e   : > { %v1182_v55 = vrot.slane %v1181_v54, 4  ;;  %v1369_v4 = vsel %vm857_vm5, %v2177_v61, 0.0 }
 0x84f   : > { %v1176_v56 = vadd.f32 %v1175_v53, %v1174_v52  ;;  %v1370_v7 = vrot.slane %v1369_v4, 4 }
 0x850   : > { %v1183_v60 = vadd.f32 %v1182_v55, %v1181_v54 }
 0x851   : > { %v1177_v62 = vrot.slane %v1176_v56, 2  ;;  %v1371_v13 = vadd.f32 %v1370_v7, %v1369_v4 }
 0x852   : > { %v1184_v63 = vrot.slane %v1183_v60, 2 }
 0x853   : > { %v1178_v1 = vadd.f32 %v1177_v62, %v1176_v56  ;;  %v1372_v15 = vrot.slane %v1371_v13, 2 }
 0x854   : > { %v1185_v3 = vadd.f32 %v1184_v63, %v1183_v60 }
 0x855   : > { %v1179_v5 = vrot.slane %v1178_v1, 1  ;;  %v1373_v18 = vadd.f32 %v1372_v15, %v1371_v13 }
 0x856   : > { %v1186_v6 = vrot.slane %v1185_v3, 1 }
 0x857   : > { %v1180_v11 = vadd.f32 %v1179_v5, %v1178_v1  ;;  %v1374_v23 = vrot.slane %v1373_v18, 1 }
 0x858   : > { %v1187_v12 = vadd.f32 %v1186_v6, %v1185_v3 }
 0x859   : > { %2178 = vrcp.f32 %v1180_v11  ;;  %v1375_v28 = vadd.f32 %v1374_v23, %v1373_v18 }
 0x85a   : > { %2180 = vrcp.f32 %v1187_v12 }
 0x85b   : > { %2182 = vrcp.f32 %v1382_v16 }
 0x85c   : > { %2184 = vrcp.f32 %v1375_v28 }
 0x863   : > { %v2179_v17 = vpop.eup %2178 }
 0x864   : > { %v2181_v19 = vpop.eup %2180  ;;  %v1192_v20 = vmul.f32 %v2179_v17, %v2173_v49 }
 0x865   : > { %v1193_v21 = vmul.f32 %v2181_v19, %v2175_v51  ;;  %v2183_v30 = vpop.eup %2182 }
 0x866   : > { %v1194_v22 = vpack.c.bf16 %v1192_v20, %v1192_v20  ;;  %v1388_v31 = vmul.f32 %v2183_v30, %v2171_v47  ;;  %v2185_v35 = vpop.eup %2184 }
 0x867   : > { %v1195_v25 = vpack.c.bf16 %v1193_v21, %v1193_v21  ;;  %v1387_v8 = vmul.f32 %v2185_v35, %v2177_v61 }
 0x868   : > { %v1221_v27 = vsel %vm1219_vm12, %v1194_v22, 0  ;;  %v1390_v34 = vpack.c.bf16 %v1388_v31, %v1388_v31 }
 0x869   : > { %2067 = vmatprep.subr.msk.bf16.mxu0 %vm1219_vm12, %v1195_v25  ;;  %v1389_v36 = vpack.c.bf16 %v1387_v8, %v1387_v8 }
 0x86a   : > { %1227 = vmatpush1.bf16.msra.mxu0 %v1221_v27 }
 0x86b   : > { %1391 = vmatprep.subr.bf16.mxu0 %v2631_v43 }
 0x86d   : > { %2068 = vmatmul.mubr.msk.bf16.vlgmr.msra.gmra.mrb[32].mxu0 %vm1212_vm13, %v1204_v29 }
 0x86e   : > { %1268 = vmatprep.mubr.bf16.mxu0 %v2313_v0 }
 0x873   : > { %1392 = vmatpush1.bf16.xpose.msra.mxu0 %v2629_v41 }
 0x874   : > { %1393 = vmatprep.subr.bf16.mxu0 %v2639_v58 }
 0x875   : > { %2069 = vmatmul.mubr.msk.bf16.gmra.mrb[36].mxu0 %vm1212_vm13, %v1205_v33 }
 0x876   : > { %1423 = vmatprep.mubr.bf16.mxu0 %v1390_v34 }
 0x87b   : > { %1394 = vmatpush1.bf16.xpose.msra.mxu0 %v2636_v57 }
 0x87c   : > { %1454 = vmatprep.subr.bf16.mxu0 %v2631_v43 }
 0x882   : > { %1424 = vmatmul.mubr.bf16.vlgmr.msra.gmra.mrb[40].mxu0 %v1389_v36 }
 0x883   : > { %1455 = vmatpush1.bf16.msra.mxu0 %v2629_v41  ;;  %1486 = vmatprep.mubr.bf16.mxu0 %v2313_v0 }
 0x884   : > { %1456 = vmatprep.subr.bf16.mxu0 %v2639_v58 }
 0x887   : > { %1457 = vmatpush1.bf16.msra.mxu0 %v2636_v57 }
 0x888   : > { %1602 = vmatprep.subr.bf16.mxu0 %v2631_v43 }
 0x940   : > { %v2718_v32 = vpop.f32.mrb[32].mxu0 }
 0x941   : > { %v2720_v10 = vpop.f32.mrb[33].mxu0 }
 0x942   : > { %v2722_v37 = vpop.f32.mrb[34].mxu0 }
 0x943   : > { %v1830_v26 = vpack.c.bf16 %v2722_v37, %v2718_v32  ;;  %v2726_v38 = vpop.f32.mrb[35].mxu0 }
 0x944   : > { %v1831_v24 = vpack.c.bf16 %v2726_v38, %v2720_v10 }
 0x948   : > { %v2730_v39 = vpop.f32.mrb[36].mxu0 }
 0x949   : > { %v2732_v40 = vpop.f32.mrb[37].mxu0 }
 0x94a   : > { %v2734_v42 = vpop.f32.mrb[38].mxu0 }
 0x94b   : > { %v1832_v44 = vpack.c.bf16 %v2734_v42, %v2730_v39  ;;  %v2738_v45 = vpop.f32.mrb[39].mxu0  ;;  %v429_v42 = vld [vmem:[%s2861_s7] sm:$0xff] }
 0x94c   : > { %v1833_v46 = vpack.c.bf16 %v2738_v45, %v2732_v40 }
 0x955   : > { %v1425_v47 = vpop.f32.mrb[40].mxu0 }
 0x956   : > { %v1431_v48 = vmul.f32 %v1425_v47, %v1425_v47  ;;  %v1427_v49 = vpop.f32.mrb[41].mxu0 }
 0x957   : > { %v1428_v50 = vpop.f32.mrb[42].mxu0 }
 0x958   : > { %v1432_v51 = vsel %vm791_vm2, %v1431_v48, 0.0  ;;  %v1429_v52 = vpop.f32.mrb[43].mxu0 }
 0x959   : > { %v1433_v53 = vrot.slane %v1432_v51, 4 }
 0x95b   : > { %v1434_v54 = vadd.f32 %v1433_v53, %v1432_v51 }
 0x95d   : > { %v1435_v55 = vrot.slane %v1434_v54, 2 }
 0x95f   : > { %v1436_v56 = vadd.f32 %v1435_v55, %v1434_v54 }
 0x961   : > { %v1437_v59 = vrot.slane %v1436_v56, 1 }
 0x963   : > { %v1438_v60 = vadd.f32 %v1437_v59, %v1436_v56 }
 0x965   : > { %2186 = vrsqrt.f32 %v1438_v60  ;;  %vm1441_vm14 = vcmp.eq.f32.partialorder %v1438_v60, inf  ;;  %v1444_v63 = vand.u32 2147483648, %v1438_v60  ;;  %vm1443_vm15 = vcmp.eq.f32.partialorder %v1438_v60, 0.0 }
 0x96f   : > { %v2187_v61 = vpop.eup %2186 }
 0x970   : > { %v1440_v62 = vmul.f32 %v2187_v61, %v1438_v60 }
 0x972   : > { %v1442_v1 = vsel %vm1441_vm14, %v1438_v60, %v1440_v62 }
 0x973   : > { %v1445_v2 = vsel %vm1443_vm15, %v1444_v63, %v1442_v1 }
 0x974   : > { %v1446_v3 = vadd.f32 1e-08, %v1445_v2 }
 0x976   : > { %2188 = vrcp.f32 %v1446_v3 }
 0x980   : > { %v2189_v4 = vpop.eup %2188 }
 0x981   : > { %v1449_v5 = vmul.f32 %v2189_v4, %v1425_v47 }
 0x983   : > { %v1450_v6 = vpack.c.bf16 %v1449_v5, %v1449_v5 }
 0x985   : > { %2071 = vmatmul.mubr.msk.bf16.vlgmr.msra.gmra.mrb[44].mxu0 %vm485_vm0, %v1450_v6 }
 0x986   : > { %1603 = vmatpush1.bf16.msra.mxu0 %v2629_v41  ;;  %1634 = vmatprep.mubr.bf16.mxu0 %v2313_v0 }
 0x987   : > { %1604 = vmatprep.subr.bf16.mxu0 %v2639_v58 }
 0x98a   : > { %1605 = vmatpush1.bf16.msra.mxu0 %v2636_v57 }
 0x98b   : > { %1687 = vmatprep.subr.bf16.mxu0 %v2631_v43 }
 0xa58   : > { %v1488_v7 = vpop.f32.mrb[44].mxu0 }
 0xa59   : > { %v1495_v9 = vmul.f32 0.17677669, %v1488_v7  ;;  %v1490_v11 = vpop.f32.mrb[45].mxu0 }
 0xa5a   : > { %v1496_v12 = vmul.f32 0.17677669, %v1490_v11  ;;  %v1492_v13 = vpop.f32.mrb[46].mxu0 }
 0xa5b   : > { %v1497_v14 = vsel %vm857_vm5, %v1495_v9, -inf  ;;  %v1493_v15 = vpop.f32.mrb[47].mxu0 }
 0xa5c   : > { %v1498_v16 = vrot.slane %v1497_v14, 4  ;;  %v1504_v17 = vsel %vm857_vm5, %v1496_v12, -inf }
 0xa5d   : > { %v1505_v18 = vrot.slane %v1504_v17, 4 }
 0xa5e   : > { %v1499_v19 = vmax.f32 %v1497_v14, %v1498_v16 }
 0xa5f   : > { %v1506_v20 = vmax.f32 %v1504_v17, %v1505_v18 }
 0xa60   : > { %v1500_v21 = vrot.slane %v1499_v19, 2 }
 0xa61   : > { %v1507_v22 = vrot.slane %v1506_v20, 2 }
 0xa62   : > { %v1501_v23 = vmax.f32 %v1499_v19, %v1500_v21 }
 0xa63   : > { %v1508_v25 = vmax.f32 %v1506_v20, %v1507_v22 }
 0xa64   : > { %v1502_v27 = vrot.slane %v1501_v23, 1 }
 0xa65   : > { %v1509_v43 = vrot.slane %v1508_v25, 1 }
 0xa66   : > { %v1503_v28 = vmax.f32 %v1501_v23, %v1502_v27 }
 0xa67   : > { %v1510_v29 = vmax.f32 %v1508_v25, %v1509_v43 }
 0xa68   : > { %v1511_v30 = vsub.f32 %v1495_v9, %v1503_v28 }
 0xa69   : > { %v1512_v31 = vsub.f32 %v1496_v12, %v1510_v29 }
 0xa6a   : > { %v1513_v33 = vmul.f32 1.442695, %v1511_v30 }
 0xa6b   : > { %v1515_v34 = vmul.f32 1.442695, %v1512_v31 }
 0xa6c   : > { %2190 = vpow2.f32 %v1513_v33 }
 0xa6d   : > { %2192 = vpow2.f32 %v1515_v34 }
 0xa76   : > { %v2191_v35 = vpop.eup %2190 }
 0xa77   : > { %v2193_v8 = vpop.eup %2192  ;;  %v1517_v36 = vsel %vm857_vm5, %v2191_v35, 0.0 }
 0xa78   : > { %v1518_v47 = vrot.slane %v1517_v36, 4  ;;  %v1524_v48 = vsel %vm857_vm5, %v2193_v8, 0.0 }
 0xa79   : > { %v1525_v49 = vrot.slane %v1524_v48, 4 }
 0xa7a   : > { %v1519_v50 = vadd.f32 %v1518_v47, %v1517_v36 }
 0xa7b   : > { %v1526_v51 = vadd.f32 %v1525_v49, %v1524_v48 }
 0xa7c   : > { %v1520_v52 = vrot.slane %v1519_v50, 2 }
 0xa7d   : > { %v1527_v53 = vrot.slane %v1526_v51, 2 }
 0xa7e   : > { %v1521_v54 = vadd.f32 %v1520_v52, %v1519_v50 }
 0xa7f   : > { %v1528_v55 = vadd.f32 %v1527_v53, %v1526_v51 }
 0xa80   : > { %v1522_v56 = vrot.slane %v1521_v54, 1 }
 0xa81   : > { %v1529_v59 = vrot.slane %v1528_v55, 1 }
 0xa82   : > { %v1523_v60 = vadd.f32 %v1522_v56, %v1521_v54 }
 0xa83   : > { %v1530_v61 = vadd.f32 %v1529_v59, %v1528_v55 }
 0xa84   : > { %2194 = vrcp.f32 %v1523_v60 }
 0xa85   : > { %2196 = vrcp.f32 %v1530_v61 }
 0xa8e   : > { %v2195_v62 = vpop.eup %2194 }
 0xa8f   : > { %v2197_v63 = vpop.eup %2196  ;;  %v1535_v1 = vmul.f32 %v2195_v62, %v2191_v35 }
 0xa90   : > { %v1536_v2 = vmul.f32 %v2197_v63, %v2193_v8 }
 0xa91   : > { %v1537_v4 = vpack.c.bf16 %v1535_v1, %v1535_v1 }
 0xa92   : > { %v1538_v3 = vpack.c.bf16 %v1536_v2, %v1536_v2 }
 0xa94   : > { %1571 = vmatprep.mubr.bf16.mxu1 %v1538_v3 }
 0xa95   : > { %1572 = vmatmul.mubr.bf16.vlgmr.msra.gmra.mrb[28].mxu1 %v1537_v4 }
 0xa96   : > { %1807 = vmatprep.mubr.bf16.mxu1 %v2313_v0 }
 0xb68   : > { %v1573_v5 = vpop.f32.mrb[28].mxu1 }
 0xb69   : > { %v1579_v6 = vmul.f32 %v1573_v5, %v1573_v5  ;;  %v1575_v7 = vpop.f32.mrb[29].mxu1 }
 0xb6a   : > { %v1576_v9 = vpop.f32.mrb[30].mxu1 }
 0xb6b   : > { %v1580_v11 = vsel %vm791_vm2, %v1579_v6, 0.0  ;;  %v1577_v12 = vpop.f32.mrb[31].mxu1 }
 0xb6c   : > { %v1581_v13 = vrot.slane %v1580_v11, 4 }
 0xb6e   : > { %v1582_v14 = vadd.f32 %v1581_v13, %v1580_v11 }
 0xb70   : > { %v1583_v15 = vrot.slane %v1582_v14, 2 }
 0xb72   : > { %v1584_v16 = vadd.f32 %v1583_v15, %v1582_v14 }
 0xb74   : > { %v1585_v17 = vrot.slane %v1584_v16, 1 }
 0xb76   : > { %v1586_v18 = vadd.f32 %v1585_v17, %v1584_v16 }
 0xb78   : > { %2198 = vrsqrt.f32 %v1586_v18  ;;  %vm1589_vm3 = vcmp.eq.f32.partialorder %v1586_v18, inf  ;;  %v1592_v21 = vand.u32 2147483648, %v1586_v18  ;;  %vm1591_vm4 = vcmp.eq.f32.partialorder %v1586_v18, 0.0 }
 0xb82   : > { %v2199_v19 = vpop.eup %2198 }
 0xb83   : > { %v1588_v20 = vmul.f32 %v2199_v19, %v1586_v18 }
 0xb85   : > { %v1590_v22 = vsel %vm1589_vm3, %v1586_v18, %v1588_v20 }
 0xb86   : > { %v1593_v23 = vsel %vm1591_vm4, %v1592_v21, %v1590_v22 }
 0xb87   : > { %v1594_v25 = vadd.f32 1e-08, %v1593_v23 }
 0xb89   : > { %2200 = vrcp.f32 %v1594_v25 }
 0xb93   : > { %v2201_v27 = vpop.eup %2200 }
 0xb94   : > { %v1597_v43 = vmul.f32 %v2201_v27, %v1573_v5 }
 0xb96   : > { %v1598_v28 = vpack.c.bf16 %v1597_v43, %v1597_v43 }
 0xb98   : > { %2072 = vmatmul.mubr.msk.bf16.vlgmr.msra.gmra.mrb[48].mxu0 %vm485_vm0, %v1598_v28 }
 0xb99   : > { %1688 = vmatpush1.bf16.xpose.msra.mxu0 %v2629_v41 }
 0xb9a   : > { %1689 = vmatprep.subr.bf16.mxu0 %v2639_v58 }
 0xba1   : > { %1690 = vmatpush1.bf16.xpose.msra.mxu0 %v2636_v57 }
 0xc6b   : > { %v1636_v29 = vpop.f32.mrb[48].mxu0 }
 0xc6c   : > { %v1643_v30 = vmul.f32 0.17677669, %v1636_v29  ;;  %v1638_v31 = vpop.f32.mrb[49].mxu0 }
 0xc6d   : > { %v1644_v33 = vmul.f32 0.17677669, %v1638_v31  ;;  %v1640_v34 = vpop.f32.mrb[50].mxu0 }
 0xc6e   : > { %v1645_v35 = vsel %vm857_vm5, %v1643_v30, -inf  ;;  %v1641_v8 = vpop.f32.mrb[51].mxu0 }
 0xc6f   : > { %v1646_v36 = vrot.slane %v1645_v35, 4  ;;  %v1652_v47 = vsel %vm857_vm5, %v1644_v33, -inf }
 0xc70   : > { %v1653_v48 = vrot.slane %v1652_v47, 4 }
 0xc71   : > { %v1647_v49 = vmax.f32 %v1645_v35, %v1646_v36 }
 0xc72   : > { %v1654_v50 = vmax.f32 %v1652_v47, %v1653_v48 }
 0xc73   : > { %v1648_v51 = vrot.slane %v1647_v49, 2 }
 0xc74   : > { %v1655_v41 = vrot.slane %v1654_v50, 2 }
 0xc75   : > { %v1649_v52 = vmax.f32 %v1647_v49, %v1648_v51 }
 0xc76   : > { %v1656_v58 = vmax.f32 %v1654_v50, %v1655_v41 }
 0xc77   : > { %v1650_v53 = vrot.slane %v1649_v52, 1 }
 0xc78   : > { %v1657_v57 = vrot.slane %v1656_v58, 1 }
 0xc79   : > { %v1651_v54 = vmax.f32 %v1649_v52, %v1650_v53  ;;  %v434_v52 = vld [vmem:[%s2862_s8 + $0x8] sm:$0xff] }
 0xc7a   : > { %v1658_v55 = vmax.f32 %v1656_v58, %v1657_v57  ;;  %v436_v58 = vld [vmem:[%s2862_s8 + $0x18] sm:$0xff] }
 0xc7b   : > { %v1659_v56 = vsub.f32 %v1643_v30, %v1651_v54 }
 0xc7c   : > { %v1660_v59 = vsub.f32 %v1644_v33, %v1658_v55 }
 0xc7d   : > { %v1661_v60 = vmul.f32 1.442695, %v1659_v56 }
 0xc7e   : > { %v1663_v61 = vmul.f32 1.442695, %v1660_v59 }
 0xc7f   : > { %2202 = vpow2.f32 %v1661_v60 }
 0xc80   : > { %2204 = vpow2.f32 %v1663_v61 }
 0xc89   : > { %v2203_v62 = vpop.eup %2202 }
 0xc8a   : > { %v2205_v63 = vpop.eup %2204  ;;  %v1665_v1 = vsel %vm857_vm5, %v2203_v62, 0.0 }
 0xc8b   : > { %v1666_v2 = vrot.slane %v1665_v1, 4  ;;  %v1672_v3 = vsel %vm857_vm5, %v2205_v63, 0.0 }
 0xc8c   : > { %v1673_v4 = vrot.slane %v1672_v3, 4 }
 0xc8d   : > { %v1667_v5 = vadd.f32 %v1666_v2, %v1665_v1  ;;  %v1841_v2 = vpop.permute.xlu0 %1840 }
 0xc8e   : > { %v1674_v6 = vadd.f32 %v1673_v4, %v1672_v3 }
 0xc8f   : > { %v1668_v7 = vrot.slane %v1667_v5, 2 }
 0xc90   : > { %v1675_v9 = vrot.slane %v1674_v6, 2 }
 0xc91   : > { %v1669_v11 = vadd.f32 %v1668_v7, %v1667_v5 }
 0xc92   : > { %v1676_v12 = vadd.f32 %v1675_v9, %v1674_v6 }
 0xc93   : > { %v1670_v13 = vrot.slane %v1669_v11, 1 }
 0xc94   : > { %v1677_v14 = vrot.slane %v1676_v12, 1 }
 0xc95   : > { %v1671_v15 = vadd.f32 %v1670_v13, %v1669_v11 }
 0xc96   : > { %v1678_v16 = vadd.f32 %v1677_v14, %v1676_v12 }
 0xc97   : > { %2206 = vrcp.f32 %v1671_v15 }
 0xc98   : > { %2208 = vrcp.f32 %v1678_v16 }
 0xca1   : > { %v2207_v17 = vpop.eup %2206 }
 0xca2   : > { %v2209_v18 = vpop.eup %2208  ;;  %v1683_v19 = vmul.f32 %v2207_v17, %v2203_v62  ;;  %v431_v62 = vld [vmem:[%s2861_s7 + $0x10] sm:$0xff]  ;;  %v1851_v17 = vpop.permute.xlu0 %1850 }
 0xca3   : > { %v1684_v20 = vmul.f32 %v2209_v18, %v2205_v63  ;;  %v432_v63 = vld [vmem:[%s2861_s7 + $0x18] sm:$0xff] }
 0xca4   : > { %v1685_v21 = vpack.c.bf16 %v1683_v19, %v1683_v19  ;;  %v1829_v1 = vpack.c.bf16 %v432_v63, %v431_v62 }
 0xca5   : > { %v1686_v22 = vpack.c.bf16 %v1684_v20, %v1684_v20 }
 0xca6   : > { %v1770_v23 = vsel %vm1219_vm12, %v1685_v21, 0 }
 0xca7   : > { %1719 = vmatprep.mubr.bf16.mxu0 %v1686_v22  ;;  %2073 = vmatprep.subr.msk.bf16.mxu1 %vm1219_vm12, %v1686_v22 }
 0xca8   : > { %1720 = vmatmul.mubr.bf16.vlgmr.msra.gmra.mrb[52].mxu0 %v1685_v21  ;;  %1776 = vmatpush1.bf16.msra.mxu1 %v1770_v23 }
 0xca9   : > { %1864 = vmatprep.subr.bf16.mxu1 %v1831_v24 }
 0xd7b   : > { %v1721_v25 = vpop.f32.mrb[52].mxu0 }
 0xd7c   : > { %v1727_v27 = vmul.f32 %v1721_v25, %v1721_v25  ;;  %v1723_v43 = vpop.f32.mrb[53].mxu0 }
 0xd7d   : > { %v1724_v28 = vpop.f32.mrb[54].mxu0 }
 0xd7e   : > { %v1728_v29 = vsel %vm791_vm2, %v1727_v27, 0.0  ;;  %v1725_v30 = vpop.f32.mrb[55].mxu0 }
 0xd7f   : > { %v1729_v31 = vrot.slane %v1728_v29, 4 }
 0xd81   : > { %v1730_v33 = vadd.f32 %v1729_v31, %v1728_v29 }
 0xd83   : > { %v1731_v34 = vrot.slane %v1730_v33, 2 }
 0xd85   : > { %v1732_v35 = vadd.f32 %v1731_v34, %v1730_v33 }
 0xd87   : > { %v1733_v8 = vrot.slane %v1732_v35, 1 }
 0xd89   : > { %v1734_v36 = vadd.f32 %v1733_v8, %v1732_v35 }
 0xd8b   : > { %2210 = vrsqrt.f32 %v1734_v36  ;;  %vm1737_vm0 = vcmp.eq.f32.partialorder %v1734_v36, inf  ;;  %v1740_v49 = vand.u32 2147483648, %v1734_v36  ;;  %vm1739_vm5 = vcmp.eq.f32.partialorder %v1734_v36, 0.0 }
 0xd95   : > { %v2211_v47 = vpop.eup %2210 }
 0xd96   : > { %v1736_v48 = vmul.f32 %v2211_v47, %v1734_v36 }
 0xd98   : > { %v1738_v10 = vsel %vm1737_vm0, %v1734_v36, %v1736_v48 }
 0xd99   : > { %v1741_v38 = vsel %vm1739_vm5, %v1740_v49, %v1738_v10 }
 0xd9a   : > { %v1742_v24 = vadd.f32 1e-08, %v1741_v38 }
 0xd9c   : > { %2212 = vrcp.f32 %v1742_v24 }
 0xda6   : > { %v2213_v50 = vpop.eup %2212 }
 0xda7   : > { %v1745_v51 = vmul.f32 %v2213_v50, %v1721_v25 }
 0xda9   : > { %v1746_v41 = vpack.c.bf16 %v1745_v51, %v1745_v51 }
 0xdab   : > { %1747 = vxpose.xlu1.c.b16.start.end [1/1] (short) (narrow) %v1746_v41, 32 }
 0xdb3   : > { %1845 = vperm.xlu1 %2136, %v434_v52  }
 0xdb7   : > { %1855 = vperm.xlu1 %2136, %v436_v58  }
 0xe11   : > { %v1755_v53 = vpop.trf.xlu1 }
 0xe12   : > { %2074 = vmatmul.mubr.msk.bf16.vlgmr.msra.gmra.mrb[32].mxu1 %vm1212_vm13, %v1755_v53 }
 0xe13   : > { %1865 = vmatpush1.bf16.msra.mxu1 %v1830_v26  ;;  %1817 = vmatprep.mubr.bf16.mxu1 %v2313_v0 }
 0xe14   : > { %1866 = vmatprep.subr.bf16.mxu1 %v1833_v46 }
 0xe15   : > { %v1756_v57 = vpop.trf.xlu1 }
 0xe17   : > { %1867 = vmatpush1.bf16.msra.mxu1 %v1832_v44  ;;  %v430_v44 = vld [vmem:[%s2861_s7 + $0x8] sm:$0xff] }
 0xe18   : > { %v1828_v61 = vpack.c.bf16 %v430_v44, %v429_v42 }
 0xe1a   : > { %2075 = vmatmul.mubr.msk.bf16.gmra.mrb[36].mxu1 %vm1212_vm13, %v1756_v57 }
 0xe1b   : > { %1896 = vmatprep.mubr.bf16.mxu1 %v2313_v0 }
 0xe32   : > { %v1846_v6 = vpop.permute.xlu1 %1845 }
 0xe36   : > { %v1856_v21 = vpop.permute.xlu1 %1855 }
 0xee5   : > { %v1809_v54 = vpop.f32.mrb[32].mxu1 }
 0xee6   : > { %v1811_v55 = vpop.f32.mrb[33].mxu1 }
 0xee7   : > { %v1813_v56 = vpop.f32.mrb[34].mxu1 }
 0xee8   : > { %v1834_v32 = vpack.c.bf16 %v1813_v56, %v1809_v54  ;;  %v1815_v37 = vpop.f32.mrb[35].mxu1 }
 0xee9   : > { %v1835_v26 = vpack.c.bf16 %v1815_v37, %v1811_v55 }
 0xeeb   : > { %1868 = vmatprep.subr.bf16.mxu1 %v1835_v26 }
 0xeec   : > { %1869 = vmatpush1.bf16.msra.mxu1 %v1834_v32 }
 0xeed   : > { %v1819_v59 = vpop.f32.mrb[36].mxu1 }
 0xeee   : > { %v1821_v40 = vpop.f32.mrb[37].mxu1 }
 0xeef   : > { %v1823_v45 = vpop.f32.mrb[38].mxu1 }
 0xef0   : > { %v1836_v46 = vpack.c.bf16 %v1823_v45, %v1819_v59  ;;  %v1825_v39 = vpop.f32.mrb[39].mxu1 }
 0xef1   : > { %v1837_v60 = vpack.c.bf16 %v1825_v39, %v1821_v40 }
 0xef3   : > { %1870 = vmatprep.subr.bf16.mxu1 %v1837_v60 }
 0xef4   : > { %1871 = vmatpush1.bf16.msra.mxu1 %v1836_v46 }
 0xef7   : > { %2076 = vmatmul.mubr.msk.bf16.vlgmr.msra.gmra.mrb[40].mxu1 %vm639_vm1, %v1828_v61 }
 0xef8   : > { %1906 = vmatprep.mubr.bf16.mxu1 %v2313_v0 }
 0xeff   : > { %2077 = vmatmul.mubr.msk.bf16.gmra.mrb[44].mxu1 %vm639_vm1, %v1829_v1 }
 0xfca   : > { %v1898_v3 = vpop.f32.mrb[40].mxu1 }
 0xfcb   : > { %v1899_v4 = vadd.f32 %v1898_v3, %v1841_v2  ;;  %v1900_v5 = vpop.f32.mrb[41].mxu1 }
 0xfcc   : > { %v1901_v7 = vadd.f32 %v1900_v5, %v1841_v2  ;;  %v1902_v9 = vpop.f32.mrb[42].mxu1 }
 0xfcd   : > { %v1917_v0 = vmax.f32 %v1899_v4, 0.0  ;;  %v1903_v11 = vadd.f32 %v1902_v9, %v1846_v6  ;;  %v1904_v12 = vpop.f32.mrb[43].mxu1 }
 0xfce   : > { %v1918_v13 = vmax.f32 %v1901_v7, 0.0  ;;  %v1905_v14 = vadd.f32 %v1904_v12, %v1846_v6 }
 0xfcf   : > { %1925 = vst [vmem:[%s376_s25] sm:$0xff] %v1917_v0  ;;  %v1919_v15 = vmax.f32 %v1903_v11, 0.0 }
 0xfd0   : > { %1926 = vst [vmem:[%s376_s25 + $0x8] sm:$0xff] %v1918_v13  ;;  %v1920_v16 = vmax.f32 %v1905_v14, 0.0 }
 0xfd1   : > { %1927 = vst [vmem:[%s376_s25 + $0x10] sm:$0xff] %v1919_v15 }
 0xfd2   : > { %1928 = vst [vmem:[%s376_s25 + $0x18] sm:$0xff] %v1920_v16  ;;  %v1908_v18 = vpop.f32.mrb[44].mxu1 }
 0xfd3   : > { %v1909_v19 = vadd.f32 %v1908_v18, %v1851_v17  ;;  %v1910_v20 = vpop.f32.mrb[45].mxu1 }
 0xfd4   : > { %v1911_v22 = vadd.f32 %v1910_v20, %v1851_v17  ;;  %v1912_v23 = vpop.f32.mrb[46].mxu1 }
 0xfd5   : > { %v1921_v25 = vmax.f32 %v1909_v19, 0.0  ;;  %v1913_v27 = vadd.f32 %v1912_v23, %v1856_v21  ;;  %v1914_v43 = vpop.f32.mrb[47].mxu1 }
 0xfd6   : > { %v1922_v28 = vmax.f32 %v1911_v22, 0.0  ;;  %v1915_v29 = vadd.f32 %v1914_v43, %v1856_v21 }
 0xfd7   : > { %1929 = vst [vmem:[%s376_s25 + $0x20] sm:$0xff] %v1921_v25  ;;  %v1923_v30 = vmax.f32 %v1913_v27, 0.0 }
 0xfd8   : > { %1930 = vst [vmem:[%s376_s25 + $0x28] sm:$0xff] %v1922_v28  ;;  %v1924_v31 = vmax.f32 %v1915_v29, 0.0 }
 0xfd9   : > { %1931 = vst [vmem:[%s376_s25 + $0x30] sm:$0xff] %v1923_v30 }
 0xfda   : > { %1932 = vst [vmem:[%s376_s25 + $0x38] sm:$0xff] %v1924_v31 }
 0xfdb   : > { %2257 = shalt.err (!%p2254_p5)
}
 0xfdc   : > { %s2258_s20 = scalar_lea.hbm %s2810_s14, 1024  ;;  %s2262_s26 = scalar_lea.hbm %s2863_s9, 2048 }
 0xfdd   : > { %p2259_p8 = scmp.ne.s32.totalorder %s2810_s14, %s2258_s20  ;;  %p2263_p1 = scmp.lt.u32.totalorder %s2810_s14, %s2863_s9 }
 0xfde   : > { %p2264_p3 = scmp.lt.u32.totalorder %s2262_s26, %s2258_s20  ;;  %p2266_p6 = scmp.lt.u32.totalorder %s2258_s20, %s2810_s14 }
 0xfdf   : > { %p2260_p9 = pnand %p2259_p8, %p2874_p12 }
 0xfe0   : > { %p2265_p11 = por %p2264_p3, %p2263_p1 }
 0xfe1   : > { %p2261_p0 = pneg %p2260_p9 }
 0xfe2   : > { %p2267_p13 = por %p2266_p6, %p2265_p11 }
 0xfe4   : > { %p2268_p7 = pnand %p2267_p13, %p2261_p0 }
 0xfe6   : > { %2271 = shalt.err (!%p2268_p7)
}
 0xfe7   : > { %s2315_s0 = smov 256   ;;  %s2316_s28 = smov 16  }
 0xfe8   : > { %2088 = dma.vmem_to_hbm [thread:$0]  (%p2874_p12), %s2805_s27, 1024, %s2810_s14, %s1934_s13, %s2315_s0, %s2315_s0, %s2316_s28  }
 0xfe9 PF: > { %s1962_s16 = sand.u32 1, %s2298_s30   ;;  %p2875_p10 = scmp.ne.s32.totalorder %s2869_s22, 0 }
 0xfea   : > { %p2876_p2 = scmp.ge.s32.totalorder %s2310_s12, 2  ;;  %s1963_s17 = scalar_lea.sflag [#allocation4], %s1962_s16 }
 0xfec   : > { %p2095_p4 = pnand %p2876_p2, %p2875_p10 }
 0xfee   : > { %2293 = dma.done.wait (!%p2095_p4), %s1963_s17, 1024  }
 0xfef   : > { %2295 = vsyncadd (!%p2095_p4), %s1963_s17, 4294966272  ;;  %p22_p5 = scmp.ge.s32.totalorder %s2392_s15, 4   ;;  %s2877_s30 = smov %s2302_s10 }
 0xff0   : > { %s2878_s10 = smov %s2306_s11  ;;  %s2879_s11 = smov %s2404_s18 }
 0xff1   : > { %s2880_s12 = smov %s2392_s15  ;;  %24 = sbr.rel (!%p22_p5) target bundleno = 7 (0x7), region = 107 }
 0xff8   :  { %1968 = vsyncpa [#allocation3], 1 }
 0xff9   :  { %1970 = vsyncpa [#allocation3 + $0x1], 1 }
 0xffa   :  { %1971 = vsyncpa [#allocation4], 1 }
 0xffb   :  { %1973 = vsyncpa [#allocation4 + $0x1], 1 }

</bundles_post_ra>
